<compile_context>
chip_gen: v5e
topology: v5e:2x2
jax: 0.10.0
libtpu: 0.0.40
codegen_flags: <defaults>
</compile_context>

<pallas_src>
import numpy as np
import jax
import jax.numpy as jnp
from jax import lax
from jax.experimental import pallas as pl
from jax.experimental.pallas import tpu as pltpu


# ----------------------------- Pallas kernel ------------------------------- #

def _make_conv_relu_kernel(OH, OW, KH, KW):
    """Conv2d(KHxKW, stride=1) + bias + ReLU for one zero-padded batch element.

    The conv is unrolled into KH*KW taps; each tap is a lane-dense
    (OH*OW, C) x (C, K) MXU matmul accumulated in f32.
    """
    def kernel(x_ref, w_ref, b_ref, o_ref):
        # x_ref: (Hp, Wp, C)     one zero-padded batch element, channels last
        # w_ref: (KH*KW, C, K)   per-tap weights (contraction dim C, lanes K)
        # b_ref: (1, K)
        # o_ref: (OH*OW, K)      lane-dense output (K = out_channels)
        C = x_ref.shape[-1]
        x = x_ref[...]                                            # load once
        acc = jnp.zeros((OH * OW, o_ref.shape[-1]), jnp.float32)
        for dy in range(KH):
            for dx in range(KW):
                patch = x[dy:dy + OH, dx:dx + OW, :]              # (OH, OW, C)
                patch2d = patch.reshape(OH * OW, C)               # lane dim kept
                acc = acc + jnp.dot(patch2d, w_ref[dy * KW + dx],
                                    preferred_element_type=jnp.float32)
        o_ref[...] = jnp.maximum(acc + b_ref[...], 0.0)           # bias + ReLU
    return kernel


# ------------------------------ param prep --------------------------------- #

def prepare_params(conv_w, conv_b):
    """One-time parameter preprocessing (hoisted OUT of the forward path)."""
    K, C, KH, KW = conv_w.shape                     # torch layout: (O, I, KH, KW)
    w_taps = jnp.transpose(conv_w, (2, 3, 1, 0)).reshape(KH * KW, C, K)
    return {"w_taps": w_taps, "b": conv_b.reshape(1, K), "KH": KH, "KW": KW}


# -------------------------------- forward ---------------------------------- #

def conv_block_forward(x_nchw, prep, *, stride=1, padding=0):
    N, C, H, W = x_nchw.shape
    KH, KW = prep["KH"], prep["KW"]
    K = prep["w_taps"].shape[-1]
    # TODO(synk): only stride=1 is implemented in-kernel; a stride-2 ConvBlock
    # (GoogLeNet stem) would need strided patch slicing inside the kernel.
    assert stride == 1

    # Layout glue: NCHW -> NHWC + zero padding (tiny relative to the conv).
    x_nhwc = jnp.transpose(x_nchw, (0, 2, 3, 1))
    if padding:
        x_nhwc = jnp.pad(
            x_nhwc, ((0, 0), (padding, padding), (padding, padding), (0, 0)))
    Hp, Wp = H + 2 * padding, W + 2 * padding
    OH, OW = Hp - KH + 1, Wp - KW + 1

    out = pl.pallas_call(
        _make_conv_relu_kernel(OH, OW, KH, KW),
        out_shape=jax.ShapeDtypeStruct((N, OH * OW, K), jnp.float32),
        grid=(N,),
        in_specs=[
            pl.BlockSpec((None, Hp, Wp, C), lambda n: (n, 0, 0, 0)),
            pl.BlockSpec((KH * KW, C, K), lambda n: (0, 0, 0)),   # resident
            pl.BlockSpec((1, K), lambda n: (0, 0)),               # resident
        ],
        out_specs=pl.BlockSpec((None, OH * OW, K), lambda n: (n, 0, 0)),
        compiler_params=pltpu.CompilerParams(
            dimension_semantics=("parallel",)),    # both TCs used on v7x
    )(x_nhwc, prep["w_taps"], prep["b"])

    # Glue back to torch's NCHW output layout.
    return jnp.transpose(out.reshape(N, OH, OW, K), (0, 3, 1, 2))


# --------------------------- pure-JAX reference ----------------------------- #

def reference_forward(x, conv_w, conv_b, *, stride=1, padding=0):
    y = lax.conv_general_dilated(
        x, conv_w, window_strides=(stride, stride),
        padding=[(padding, padding), (padding, padding)],
        dimension_numbers=("NCHW", "OIHW", "NCHW"),
        precision=lax.Precision.HIGHEST)
    return jnp.maximum(y + conv_b[None, :, None, None], 0.0)


# ----------------------------------- main ----------------------------------- #

if __name__ == "__main__":
    N, C, H, W = 2, 32, 16, 16            # small demo shapes
    K, KS, PAD, STRIDE = 128, 3, 1, 1     # ConvBlock(32, 128, 3, padding=1)

    key = jax.random.PRNGKey(0)
    kx, kw, kb = jax.random.split(key, 3)
    x = jax.random.normal(kx, (N, C, H, W), jnp.float32)
    conv_w = jax.random.normal(kw, (K, C, KS, KS), jnp.float32) * 0.05
    conv_b = jax.random.normal(kb, (K,), jnp.float32) * 0.05

    prep = prepare_params(conv_w, conv_b)    # one-time, outside the hot path

    out = conv_block_forward(x, prep, stride=STRIDE, padding=PAD)
    out = jax.block_until_ready(out)
    assert out.shape == (N, K, H, W), out.shape

    ref = reference_forward(x, conv_w, conv_b, stride=STRIDE, padding=PAD)
    if not np.allclose(np.asarray(out), np.asarray(ref), atol=2e-3, rtol=2e-3):
        raise AssertionError("Pallas output does not match pure-JAX reference")

    print("KERNEL_OK")
</pallas_src>

<mosaic_0001>
module attributes {stable_mosaic.version = 11 : i64} {
  func.func @kernel(%arg0: i32, %arg1: memref<1x18x18x32xf32, #tpu.memory_space<vmem>>, %arg2: memref<9x32x128xf32, #tpu.memory_space<vmem>>, %arg3: memref<1x128xf32, #tpu.memory_space<vmem>>, %arg4: memref<1x256x128xf32, #tpu.memory_space<vmem>>) attributes {dimension_semantics = [#tpu.dimension_semantics<parallel>], iteration_bounds = array<i64: 2>, scalar_prefetch = 0 : i64, scratch_operands = 0 : i64, tpu.core_type = #tpu.core_type<tc>, window_params = [{transform_indices = @transform_0, window_bounds = array<i64: 1, 18, 18, 32>}, {pipeline_mode = #tpu.pipeline_mode<synchronous>, transform_indices = @transform_1, window_bounds = array<i64: 9, 32, 128>}, {pipeline_mode = #tpu.pipeline_mode<synchronous>, transform_indices = @transform_2, window_bounds = array<i64: 1, 128>}, {transform_indices = @transform_3, window_bounds = array<i64: 1, 256, 128>}]} {
    %c0 = arith.constant 0 : index
    %c0_0 = arith.constant 0 : index
    %c0_1 = arith.constant 0 : index
    %c0_2 = arith.constant 0 : index
    %0 = vector.load %arg1[%c0, %c0_0, %c0_1, %c0_2] : memref<1x18x18x32xf32, #tpu.memory_space<vmem>>, vector<1x18x18x32xf32>
    %1 = vector.shape_cast %0 : vector<1x18x18x32xf32> to vector<18x18x32xf32>
    %cst = arith.constant 0.000000e+00 : f32
    %2 = vector.broadcast %cst : f32 to vector<256x128xf32>
    %3 = vector.extract_strided_slice %1 {offsets = [0, 0, 0], sizes = [16, 16, 32], strides = [1, 1, 1]} : vector<18x18x32xf32> to vector<16x16x32xf32>
    %4 = vector.shape_cast %3 : vector<16x16x32xf32> to vector<256x32xf32>
    %c0_3 = arith.constant 0 : index
    %c0_4 = arith.constant 0 : index
    %c0_5 = arith.constant 0 : index
    %5 = vector.load %arg2[%c0_3, %c0_4, %c0_5] : memref<9x32x128xf32, #tpu.memory_space<vmem>>, vector<1x32x128xf32>
    %6 = vector.shape_cast %5 : vector<1x32x128xf32> to vector<32x128xf32>
    %cst_6 = arith.constant dense<0.000000e+00> : vector<256x128xf32>
    %7 = tpu.matmul %4, %6, %cst_6 {dimension_numbers = #tpu.dot_dimension_numbers<[1], [0], [0], [1], [0, 0, 1, 1], [], []>} : vector<256x32xf32>, vector<32x128xf32>, vector<256x128xf32> -> vector<256x128xf32>
    %8 = arith.addf %2, %7 : vector<256x128xf32>
    %9 = vector.extract_strided_slice %1 {offsets = [0, 1, 0], sizes = [16, 16, 32], strides = [1, 1, 1]} : vector<18x18x32xf32> to vector<16x16x32xf32>
    %10 = vector.shape_cast %9 : vector<16x16x32xf32> to vector<256x32xf32>
    %c1 = arith.constant 1 : index
    %c0_7 = arith.constant 0 : index
    %c0_8 = arith.constant 0 : index
    %11 = vector.load %arg2[%c1, %c0_7, %c0_8] : memref<9x32x128xf32, #tpu.memory_space<vmem>>, vector<1x32x128xf32>
    %12 = vector.shape_cast %11 : vector<1x32x128xf32> to vector<32x128xf32>
    %cst_9 = arith.constant dense<0.000000e+00> : vector<256x128xf32>
    %13 = tpu.matmul %10, %12, %cst_9 {dimension_numbers = #tpu.dot_dimension_numbers<[1], [0], [0], [1], [0, 0, 1, 1], [], []>} : vector<256x32xf32>, vector<32x128xf32>, vector<256x128xf32> -> vector<256x128xf32>
    %14 = arith.addf %8, %13 : vector<256x128xf32>
    %15 = vector.extract_strided_slice %1 {offsets = [0, 2, 0], sizes = [16, 16, 32], strides = [1, 1, 1]} : vector<18x18x32xf32> to vector<16x16x32xf32>
    %16 = vector.shape_cast %15 : vector<16x16x32xf32> to vector<256x32xf32>
    %c2 = arith.constant 2 : index
    %c0_10 = arith.constant 0 : index
    %c0_11 = arith.constant 0 : index
    %17 = vector.load %arg2[%c2, %c0_10, %c0_11] : memref<9x32x128xf32, #tpu.memory_space<vmem>>, vector<1x32x128xf32>
    %18 = vector.shape_cast %17 : vector<1x32x128xf32> to vector<32x128xf32>
    %cst_12 = arith.constant dense<0.000000e+00> : vector<256x128xf32>
    %19 = tpu.matmul %16, %18, %cst_12 {dimension_numbers = #tpu.dot_dimension_numbers<[1], [0], [0], [1], [0, 0, 1, 1], [], []>} : vector<256x32xf32>, vector<32x128xf32>, vector<256x128xf32> -> vector<256x128xf32>
    %20 = arith.addf %14, %19 : vector<256x128xf32>
    %21 = vector.extract_strided_slice %1 {offsets = [1, 0, 0], sizes = [16, 16, 32], strides = [1, 1, 1]} : vector<18x18x32xf32> to vector<16x16x32xf32>
    %22 = vector.shape_cast %21 : vector<16x16x32xf32> to vector<256x32xf32>
    %c3 = arith.constant 3 : index
    %c0_13 = arith.constant 0 : index
    %c0_14 = arith.constant 0 : index
    %23 = vector.load %arg2[%c3, %c0_13, %c0_14] : memref<9x32x128xf32, #tpu.memory_space<vmem>>, vector<1x32x128xf32>
    %24 = vector.shape_cast %23 : vector<1x32x128xf32> to vector<32x128xf32>
    %cst_15 = arith.constant dense<0.000000e+00> : vector<256x128xf32>
    %25 = tpu.matmul %22, %24, %cst_15 {dimension_numbers = #tpu.dot_dimension_numbers<[1], [0], [0], [1], [0, 0, 1, 1], [], []>} : vector<256x32xf32>, vector<32x128xf32>, vector<256x128xf32> -> vector<256x128xf32>
    %26 = arith.addf %20, %25 : vector<256x128xf32>
    %27 = vector.extract_strided_slice %1 {offsets = [1, 1, 0], sizes = [16, 16, 32], strides = [1, 1, 1]} : vector<18x18x32xf32> to vector<16x16x32xf32>
    %28 = vector.shape_cast %27 : vector<16x16x32xf32> to vector<256x32xf32>
    %c4 = arith.constant 4 : index
    %c0_16 = arith.constant 0 : index
    %c0_17 = arith.constant 0 : index
    %29 = vector.load %arg2[%c4, %c0_16, %c0_17] : memref<9x32x128xf32, #tpu.memory_space<vmem>>, vector<1x32x128xf32>
    %30 = vector.shape_cast %29 : vector<1x32x128xf32> to vector<32x128xf32>
    %cst_18 = arith.constant dense<0.000000e+00> : vector<256x128xf32>
    %31 = tpu.matmul %28, %30, %cst_18 {dimension_numbers = #tpu.dot_dimension_numbers<[1], [0], [0], [1], [0, 0, 1, 1], [], []>} : vector<256x32xf32>, vector<32x128xf32>, vector<256x128xf32> -> vector<256x128xf32>
    %32 = arith.addf %26, %31 : vector<256x128xf32>
    %33 = vector.extract_strided_slice %1 {offsets = [1, 2, 0], sizes = [16, 16, 32], strides = [1, 1, 1]} : vector<18x18x32xf32> to vector<16x16x32xf32>
    %34 = vector.shape_cast %33 : vector<16x16x32xf32> to vector<256x32xf32>
    %c5 = arith.constant 5 : index
    %c0_19 = arith.constant 0 : index
    %c0_20 = arith.constant 0 : index
    %35 = vector.load %arg2[%c5, %c0_19, %c0_20] : memref<9x32x128xf32, #tpu.memory_space<vmem>>, vector<1x32x128xf32>
    %36 = vector.shape_cast %35 : vector<1x32x128xf32> to vector<32x128xf32>
    %cst_21 = arith.constant dense<0.000000e+00> : vector<256x128xf32>
    %37 = tpu.matmul %34, %36, %cst_21 {dimension_numbers = #tpu.dot_dimension_numbers<[1], [0], [0], [1], [0, 0, 1, 1], [], []>} : vector<256x32xf32>, vector<32x128xf32>, vector<256x128xf32> -> vector<256x128xf32>
    %38 = arith.addf %32, %37 : vector<256x128xf32>
    %39 = vector.extract_strided_slice %1 {offsets = [2, 0, 0], sizes = [16, 16, 32], strides = [1, 1, 1]} : vector<18x18x32xf32> to vector<16x16x32xf32>
    %40 = vector.shape_cast %39 : vector<16x16x32xf32> to vector<256x32xf32>
    %c6 = arith.constant 6 : index
    %c0_22 = arith.constant 0 : index
    %c0_23 = arith.constant 0 : index
    %41 = vector.load %arg2[%c6, %c0_22, %c0_23] : memref<9x32x128xf32, #tpu.memory_space<vmem>>, vector<1x32x128xf32>
    %42 = vector.shape_cast %41 : vector<1x32x128xf32> to vector<32x128xf32>
    %cst_24 = arith.constant dense<0.000000e+00> : vector<256x128xf32>
    %43 = tpu.matmul %40, %42, %cst_24 {dimension_numbers = #tpu.dot_dimension_numbers<[1], [0], [0], [1], [0, 0, 1, 1], [], []>} : vector<256x32xf32>, vector<32x128xf32>, vector<256x128xf32> -> vector<256x128xf32>
    %44 = arith.addf %38, %43 : vector<256x128xf32>
    %45 = vector.extract_strided_slice %1 {offsets = [2, 1, 0], sizes = [16, 16, 32], strides = [1, 1, 1]} : vector<18x18x32xf32> to vector<16x16x32xf32>
    %46 = vector.shape_cast %45 : vector<16x16x32xf32> to vector<256x32xf32>
    %c7 = arith.constant 7 : index
    %c0_25 = arith.constant 0 : index
    %c0_26 = arith.constant 0 : index
    %47 = vector.load %arg2[%c7, %c0_25, %c0_26] : memref<9x32x128xf32, #tpu.memory_space<vmem>>, vector<1x32x128xf32>
    %48 = vector.shape_cast %47 : vector<1x32x128xf32> to vector<32x128xf32>
    %cst_27 = arith.constant dense<0.000000e+00> : vector<256x128xf32>
    %49 = tpu.matmul %46, %48, %cst_27 {dimension_numbers = #tpu.dot_dimension_numbers<[1], [0], [0], [1], [0, 0, 1, 1], [], []>} : vector<256x32xf32>, vector<32x128xf32>, vector<256x128xf32> -> vector<256x128xf32>
    %50 = arith.addf %44, %49 : vector<256x128xf32>
    %51 = vector.extract_strided_slice %1 {offsets = [2, 2, 0], sizes = [16, 16, 32], strides = [1, 1, 1]} : vector<18x18x32xf32> to vector<16x16x32xf32>
    %52 = vector.shape_cast %51 : vector<16x16x32xf32> to vector<256x32xf32>
    %c8 = arith.constant 8 : index
    %c0_28 = arith.constant 0 : index
    %c0_29 = arith.constant 0 : index
    %53 = vector.load %arg2[%c8, %c0_28, %c0_29] : memref<9x32x128xf32, #tpu.memory_space<vmem>>, vector<1x32x128xf32>
    %54 = vector.shape_cast %53 : vector<1x32x128xf32> to vector<32x128xf32>
    %cst_30 = arith.constant dense<0.000000e+00> : vector<256x128xf32>
    %55 = tpu.matmul %52, %54, %cst_30 {dimension_numbers = #tpu.dot_dimension_numbers<[1], [0], [0], [1], [0, 0, 1, 1], [], []>} : vector<256x32xf32>, vector<32x128xf32>, vector<256x128xf32> -> vector<256x128xf32>
    %56 = arith.addf %50, %55 : vector<256x128xf32>
    %c0_31 = arith.constant 0 : index
    %c0_32 = arith.constant 0 : index
    %57 = vector.load %arg3[%c0_31, %c0_32] : memref<1x128xf32, #tpu.memory_space<vmem>>, vector<1x128xf32>
    %58 = vector.broadcast %57 : vector<1x128xf32> to vector<256x128xf32>
    %59 = arith.addf %56, %58 : vector<256x128xf32>
    %cst_33 = arith.constant 0.000000e+00 : f32
    %60 = vector.broadcast %cst_33 : f32 to vector<256x128xf32>
    %61 = arith.maximumf %59, %60 : vector<256x128xf32>
    %c0_34 = arith.constant 0 : index
    %c0_35 = arith.constant 0 : index
    %c0_36 = arith.constant 0 : index
    %62 = vector.load %arg4[%c0_34, %c0_35, %c0_36] : memref<1x256x128xf32, #tpu.memory_space<vmem>>, vector<1x256x128xf32>
    %63 = vector.shape_cast %62 : vector<1x256x128xf32> to vector<256x128xf32>
    %64 = vector.shape_cast %61 : vector<256x128xf32> to vector<1x256x128xf32>
    tpu.vector_store %arg4[%c0_34, %c0_35, %c0_36], %64 {strides = array<i32>} : memref<1x256x128xf32, #tpu.memory_space<vmem>>, vector<1x256x128xf32>,
    return
  }
  func.func @transform_0(%arg0: i32) -> (i32, i32, i32, i32) {
    %c0_i32 = arith.constant 0 : i32
    %c0_i32_0 = arith.constant 0 : i32
    %c0_i32_1 = arith.constant 0 : i32
    %c0_i32_2 = arith.constant 0 : i32
    return %arg0, %c0_i32, %c0_i32_0, %c0_i32_1 : i32, i32, i32, i32
  }
  func.func @transform_1(%arg0: i32) -> (i32, i32, i32) {
    %c0_i32 = arith.constant 0 : i32
    %c0_i32_0 = arith.constant 0 : i32
    %c0_i32_1 = arith.constant 0 : i32
    %c0_i32_2 = arith.constant 0 : i32
    return %c0_i32, %c0_i32_0, %c0_i32_1 : i32, i32, i32
  }
  func.func @transform_2(%arg0: i32) -> (i32, i32) {
    %c0_i32 = arith.constant 0 : i32
    %c0_i32_0 = arith.constant 0 : i32
    %c0_i32_1 = arith.constant 0 : i32
    return %c0_i32, %c0_i32_0 : i32, i32
  }
  func.func @transform_3(%arg0: i32) -> (i32, i32, i32) {
    %c0_i32 = arith.constant 0 : i32
    %c0_i32_0 = arith.constant 0 : i32
    %c0_i32_1 = arith.constant 0 : i32
    return %arg0, %c0_i32, %c0_i32_0 : i32, i32, i32
  }
}

</mosaic_0001>

<bundles_post_ra>
// kernel: tpu_custom_call.1
= control target key start
LH: loop header
LB: loop body
LE: loop exit
PB: predicated region body
PF: predicated region fallthrough
CT: control target
= control target key end

     0   :  { %8 = vsyncpa [#allocation3], 0  ;;  %s4115_s0 = inlined_call_operand.vmem [shape: f32[2,18,18,32], index: 0, kind: input, shape index: {}]   ;;  %s4116_s1 = inlined_call_operand.vmem [shape: f32[9,32,128], index: 1, kind: input, shape index: {}]   ;;  %s4117_s2 = inlined_call_operand.vmem [shape: f32[1,128], index: 2, kind: input, shape index: {}]   ;;  %s4118_s3 = inlined_call_operand.hbm [shape: f32[2,256,128], index: 3, kind: output, shape index: {}]  }
   0x1   :  { %10 = vsyncpa [#allocation3 + $0x1], 0  ;;  %s2636_s12 = smov 0   ;;  %s2638_s13 = smov 0  }
   0x2   :  { %s2640_s14 = smov 0   ;;  %s2642_s15 = smov 0  }
   0x3 LB: > { %s2657_s16 = sadd.s32 4294967295, %s2612_s15   ;;  %s2139_s17 = sadd.s32 4294967294, %s2612_s15   ;;  %s2612_s15 = sphi %s2642_s15, %s4337_s15   ;;  %s2608_s14 = sphi %s2640_s14, %s4336_s14   ;;  %s2604_s13 = sphi %s2638_s13, %s4335_s13   ;;  %s2600_s12 = sphi %s2636_s12, %s4334_s12  }
   0x4   : > { %s2661_s18 = sadd.s32 1, %s2612_s15   ;;  %s91_s19 = sadd.s32 1, %s2608_s14 }
   0x5   : > { %s88_s20 = ssub.s32 %s2612_s15, %s2661_s18  ;;  %p101_p0 = scmp.ne.s32.totalorder %s2608_s14, %s2604_s13 }
   0x6   : > { %p89_p1 = scmp.eq.s32.totalorder %s88_s20, 0  ;;  %p102_p2 = scmp.eq.s32.totalorder %s2657_s16, 1 }
   0x7   : > { %p107_p3 = scmp.ne.s32.totalorder %s2604_s13, %s2600_s12  ;;  %p108_p4 = scmp.eq.s32.totalorder %s2139_s17, 1 }
   0x8   : > { %s2672_s21 = scalar_select %p89_p1, %s2608_s14, %s91_s19  }
   0x9   : > { %p2674_p5 = por %p102_p2, %p101_p0  ;;  %p2678_p6 = por %p108_p4, %p107_p3 }
   0xa   : > { %p2142_p7 = scmp.ge.s32.totalorder %s2612_s15, 1  ;;  %p140_p8 = scmp.lt.s32.totalorder %s2612_s15, 3 }
   0xc   : > { %p141_p9 = pnand %p2142_p7, %p140_p8 }
   0xe   : > { %144 = sbr.rel (%p141_p9) target bundleno = 745 (0x2e9), region = 32 }
  0x13   : > { %v2148_v0 = vld [vmem:[%s4116_s1 + $0x38] sm:$0xff]  ;;  %v2147_v1 = vld [vmem:[%s4116_s1 + $0x30] sm:$0xff]  ;;  %p164_p10 = scmp.lt.s32.totalorder %s2657_s16, 1  ;;  %v2146_v2 = vld [vmem:[%s4116_s1 + $0x28] sm:$0xff]  ;;  %vm275_vm0 = vcmask 1046528   ;;  %vm361_vm1 = vcmask 261120  }
  0x14   : > { %2471 = vmatpush.msra.mxu1 %v2148_v0  ;;  %2472 = vmatpush.msra.mxu2 %v2148_v0  ;;  %v2145_v3 = vld [vmem:[%s4116_s1 + $0x20] sm:$0xff]  ;;  %v2216_v4 = vld [vmem:[%s4116_s1 + $0x58] sm:$0xff]  ;;  %v2215_v8 = vld [vmem:[%s4116_s1 + $0x50] sm:$0xff]  ;;  %vm716_vm2 = vcmask 1045504   ;;  %s161_s5 = sand.u32 1, %s2604_s13   ;;  %s2570_s29 = scalar_lea.hbm %s4118_s3, 512 }
  0x15   : > { %2473 = vmatpush.msra.mxu3 %v2148_v0  ;;  %s165_s30 = scalar_select %p164_p10, %s2657_s16, 1  ;;  %438 = vmatpush.msra.mxu0 %v2148_v0  ;;  %v2252_v5 = vld [vmem:[%s4116_s1 + $0x78] sm:$0xff]  ;;  %v2251_v18 = vld [vmem:[%s4116_s1 + $0x70] sm:$0xff]  ;;  %v2214_v48 = vld [vmem:[%s4116_s1 + $0x48] sm:$0xff] }
  0x16   : > { %2474 = vmatpush.msra.mxu1 %v2147_v1  ;;  %2475 = vmatpush.msra.mxu2 %v2147_v1  ;;  %v226_v6 = vld [vmem:[%s4116_s1 + $0x18] sm:$0xff]  ;;  %v225_v28 = vld [vmem:[%s4116_s1 + $0x10] sm:$0xff]  ;;  %v2250_v50 = vld [vmem:[%s4116_s1 + $0x68] sm:$0xff]  ;;  %s2143_s8 = sshll.u32 %s161_s5, 8 }
  0x17   : > { %2476 = vmatpush.msra.mxu3 %v2147_v1  ;;  %s2483_s6 = smul.u32 432, %s165_s30  ;;  %439 = vmatpush.msra.mxu0 %v2147_v1  ;;  %v2288_v7 = vld [vmem:[%s4116_s1 + $0x98] sm:$0xff]  ;;  %v2287_v35 = vld [vmem:[%s4116_s1 + $0x90] sm:$0xff]  ;;  %v224_v51 = vld [vmem:[%s4116_s1 + $0x8] sm:$0xff]  ;;  %s3872_s9 = scalar_lea.vmem [#allocation2], %s2143_s8 }
  0x18   : > { %2477 = vmatpush.msra.mxu1 %v2146_v2  ;;  %2478 = vmatpush.msra.mxu2 %v2146_v2  ;;  %v2286_v61 = vld [vmem:[%s4116_s1 + $0x88] sm:$0xff]  ;;  %s2074_s20 = sshll.u32 %s3872_s9, 4  ;;  %s2075_s20 = int_to_ptr.vmem [resolvable:$true] %s2074_s20 }
  0x19   : > { %2479 = vmatpush.msra.mxu3 %v2146_v2  ;;  %s2707_s19 = scalar_lea.vmem %s4115_s0, %s2483_s6  ;;  %440 = vmatpush.msra.mxu0 %v2146_v2 }
  0x1a   : > { %2480 = vmatpush.msra.mxu1 %v2145_v3  ;;  %2481 = vmatpush.msra.mxu2 %v2145_v3  ;;  %v2719_v9 = vld [vmem:[%s2707_s19 + $0x60] sm:$0xff]  ;;  %v2722_v10 = vld [vmem:[%s2707_s19 + $0x68] sm:$0xff]  ;;  %v2746_v22 = vld [vmem:[%s2707_s19 + $0x70] sm:$0x3] }
  0x1b   : > { %v2725_v11 = vld [vmem:[%s2707_s19 + $0xc0] sm:$0xff]  ;;  %v296_v12 = vrot.slane %v2719_v9, 1  ;;  %v297_v13 = vrot.slane %v2722_v10, 1  ;;  %v2730_v14 = vld [vmem:[%s2707_s19 + $0xc8] sm:$0xff]  ;;  %2482 = vmatpush.msra.mxu3 %v2145_v3  ;;  %v2755_v25 = vld [vmem:[%s2707_s19 + $0xd0] sm:$0x3]  ;;  %441 = vmatpush.msra.mxu0 %v2145_v3 }
  0x1c   : > { %v316_v15 = vrot.slane %v2725_v11, 1  ;;  %878 = vmatpush.msrb.mxu2 %v2216_v4  ;;  %v2734_v16 = vld [vmem:[%s2707_s19 + $0x120] sm:$0xff]  ;;  %v2737_v17 = vld [vmem:[%s2707_s19 + $0x128] sm:$0xff]  ;;  %v317_v19 = vrot.slane %v2730_v14, 1  ;;  %615 = vmatpush.msrb.mxu1 %v226_v6  ;;  %v2774_v32 = vld [vmem:[%s2707_s19 + $0x130] sm:$0x3] }
  0x1d   : > { %4196 = vst [vmem:[#allocation5_spill] sm:$0xff] %v2734_v16  ;;  %v336_v20 = vrot.slane %v2734_v16, 1  ;;  %v337_v21 = vrot.slane %v2737_v17, 1  ;;  %1034 = vmatpush.msrb.mxu3 %v2252_v5  ;;  %v2749_v23 = vld [vmem:[%s2707_s19] sm:$0xff]  ;;  %v2752_v24 = vsel %vm275_vm0, %v296_v12, %v297_v13  ;;  %v2758_v26 = vld [vmem:[%s2707_s19 + $0x8] sm:$0xff]  ;;  %1194 = vmatpush.msrb.mxu0 %v2288_v7  ;;  %v299_v33 = vrot.slane %v2746_v22, 1 }
  0x1e   : > { %4197 = vst [vmem:[#allocation6_spill] sm:$0xff] %v2737_v17  ;;  %v276_v27 = vrot.slane %v2749_v23, 1  ;;  %879 = vmatpush.msrb.mxu2 %v2215_v8  ;;  %2157 = vmatmul.msk.f32.vlgmr.msra.gmra.mxu1 %vm361_vm1, %v2752_v24  ;;  %v2767_v29 = vsel %vm275_vm0, %v316_v15, %v317_v19  ;;  %v277_v31 = vrot.slane %v2758_v26, 1  ;;  %v2782_v34 = vld [vmem:[%s2707_s19 + $0x10] sm:$0x3]  ;;  %v319_v36 = vrot.slane %v2755_v25, 1 }
  0x1f   : > { %4198 = vst [vmem:[#allocation7_spill] sm:$0xff] %v2767_v29  ;;  %v2770_v30 = vsel %vm275_vm0, %v336_v20, %v337_v21  ;;  %2165 = vmatmul.msk.f32.vlgmr.msra.gmra.mxu2 %vm361_vm1, %v2767_v29  ;;  %v339_v38 = vrot.slane %v2774_v32, 1  ;;  %1035 = vmatpush.msrb.mxu3 %v2251_v18  ;;  %v279_v39 = vrot.slane %v2782_v34, 1  ;;  %v2793_v40 = vsel %vm275_vm0, %v297_v13, %v299_v33  ;;  %v2796_v41 = vld [vmem:[%s2707_s19 + $0x78] sm:$0xff]  ;;  %v2799_v42 = vld [vmem:[%s2707_s19 + $0x80] sm:$0xff] }
  0x20   : > { %4199 = vst [vmem:[#allocation8_spill] sm:$0xff] %v2770_v30  ;;  %2173 = vmatmul.msk.f32.vlgmr.msra.gmra.mxu3 %vm361_vm1, %v2770_v30  ;;  %v278_v37 = vsel %vm275_vm0, %v276_v27, %v277_v31  ;;  %616 = vmatpush.msrb.mxu1 %v225_v28  ;;  %v2802_v43 = vld [vmem:[%s2707_s19 + $0xd8] sm:$0xff]  ;;  %v2805_v44 = vsel %vm275_vm0, %v317_v19, %v319_v36  ;;  %v2811_v46 = vld [vmem:[%s2707_s19 + $0xe0] sm:$0xff]  ;;  %v301_v53 = vrot.slane %v2796_v41, 1  ;;  %v302_v54 = vrot.slane %v2799_v42, 1 }
  0x21   : > { %4200 = vst [vmem:[#allocation9_spill] sm:$0xff] %v2774_v32  ;;  %2149 = vmatmul.msk.f32.vlgmr.msra.gmra.mxu0 %vm361_vm1, %v278_v37  ;;  %v2808_v45 = vsel %vm275_vm0, %v337_v21, %v339_v38  ;;  %v2814_v47 = vld [vmem:[%s2707_s19 + $0x138] sm:$0xff]  ;;  %v2820_v49 = vld [vmem:[%s2707_s19 + $0x140] sm:$0xff]  ;;  %880 = vmatpush.msrb.mxu2 %v2214_v48  ;;  %v280_v52 = vsel %vm275_vm0, %v277_v31, %v279_v39  ;;  %v321_v57 = vrot.slane %v2802_v43, 1  ;;  %v322_v58 = vrot.slane %v2811_v46, 1  ;;  %v2908_v31 = vld [vmem:[%s2707_s19 + $0x90] sm:$0xff] }
  0x22   : > { %1195 = vmatpush.msrb.mxu0 %v2287_v35  ;;  %4201 = vst [vmem:[#allocation10_spill] sm:$0xff] %v2793_v40  ;;  %1036 = vmatpush.msrb.mxu3 %v2250_v50  ;;  %v2838_v55 = vld [vmem:[%s2707_s19 + $0x18] sm:$0xff]  ;;  %v2841_v56 = vld [vmem:[%s2707_s19 + $0x20] sm:$0xff]  ;;  %v341_v59 = vrot.slane %v2814_v47, 1  ;;  %v342_v60 = vrot.slane %v2820_v49, 1  ;;  %v2854_v0 = vsel %vm275_vm0, %v301_v53, %v302_v54  ;;  %v2914_v35 = vld [vmem:[%s2707_s19 + $0xf0] sm:$0xff] }
  0x23   : > { %4202 = vst [vmem:[#allocation11_spill] sm:$0xff] %v2805_v44  ;;  %617 = vmatpush.msrb.mxu1 %v224_v51  ;;  %v281_v62 = vrot.slane %v2838_v55, 1  ;;  %v282_v63 = vrot.slane %v2841_v56, 1  ;;  %v2857_v1 = vsel %vm275_vm0, %v321_v57, %v322_v58  ;;  %v2863_v3 = vld [vmem:[%s2707_s19 + $0x88] sm:$0x3]  ;;  %v2213_v12 = vld [vmem:[%s4116_s1 + $0x40] sm:$0xff] }
  0x24   : > { %4203 = vst [vmem:[#allocation12_spill] sm:$0xff] %v2808_v45  ;;  %1196 = vmatpush.msrb.mxu0 %v2286_v61  ;;  %v2860_v2 = vsel %vm275_vm0, %v341_v59, %v342_v60  ;;  %v2866_v4 = vld [vmem:[%s2707_s19 + $0xe8] sm:$0x3]  ;;  %v304_v8 = vrot.slane %v2863_v3, 1  ;;  %v2249_v13 = vld [vmem:[%s4116_s1 + $0x60] sm:$0xff]  ;;  %881 = vmatpush.msrb.mxu2 %v2213_v12  ;;  %v2911_v33 = vld [vmem:[%s2707_s19 + $0x98] sm:$0xff] }
  0x25   : > { %4204 = vst [vmem:[#allocation13_spill] sm:$0xff] %v2814_v47  ;;  %v2869_v5 = vld [vmem:[%s2707_s19 + $0x148] sm:$0x3]  ;;  %v2874_v6 = vsel %vm275_vm0, %v281_v62, %v282_v63  ;;  %v223_v15 = vld [vmem:[%s4116_s1] sm:$0xff]  ;;  %v324_v18 = vrot.slane %v2866_v4, 1  ;;  %1037 = vmatpush.msrb.mxu3 %v2249_v13  ;;  %v2917_v36 = vld [vmem:[%s2707_s19 + $0xf8] sm:$0xff] }
  0x26   : > { %4205 = vst [vmem:[#allocation14_spill] sm:$0xff] %v2820_v49  ;;  %2158 = vmatmul.msk.f32.gmra.mxu1 %vm361_vm1, %v2793_v40  ;;  %v2877_v7 = vld [vmem:[%s2707_s19 + $0x28] sm:$0x3]  ;;  %v344_v19 = vrot.slane %v2869_v5, 1  ;;  %v2899_v21 = vsel %vm275_vm0, %v302_v54, %v304_v8  ;;  %v2920_v37 = vld [vmem:[%s2707_s19 + $0x150] sm:$0xff]  ;;  %v2923_v38 = vld [vmem:[%s2707_s19 + $0x158] sm:$0xff] }
  0x27   : > { %2166 = vmatmul.msk.f32.gmra.mxu2 %vm361_vm1, %v2805_v44  ;;  %4206 = vst [vmem:[#allocation15_spill] sm:$0xff] %v2854_v0  ;;  %618 = vmatpush.msrb.mxu1 %v223_v15  ;;  %v284_v20 = vrot.slane %v2877_v7, 1  ;;  %v2902_v27 = vsel %vm275_vm0, %v322_v58, %v324_v18  ;;  %v306_v48 = vrot.slane %v2908_v31, 1  ;;  %v307_v50 = vrot.slane %v2911_v33, 1  ;;  %v2937_v51 = vld [vmem:[%s2707_s19 + $0x30] sm:$0xff]  ;;  %v2285_v53 = vld [vmem:[%s4116_s1 + $0x80] sm:$0xff] }
  0x28   : > { %2174 = vmatmul.msk.f32.gmra.mxu3 %vm361_vm1, %v2808_v45  ;;  %4207 = vst [vmem:[#allocation16_spill] sm:$0xff] %v2860_v2  ;;  %v2905_v28 = vsel %vm275_vm0, %v342_v60, %v344_v19  ;;  %v326_v54 = vrot.slane %v2914_v35, 1  ;;  %v327_v57 = vrot.slane %v2917_v36, 1  ;;  %v346_v58 = vrot.slane %v2920_v37, 1  ;;  %1197 = vmatpush.msrb.mxu0 %v2285_v53  ;;  %v2963_v12 = vld [vmem:[%s2707_s19 + $0xa0] sm:$0x3] }
  0x29   : > { %2150 = vmatmul.msk.f32.gmra.mxu0 %vm361_vm1, %v280_v52  ;;  %4208 = vst [vmem:[#allocation17_spill] sm:$0xff] %v2869_v5  ;;  %v2928_v39 = vsel %vm275_vm0, %v282_v63, %v284_v20  ;;  %v2940_v52 = vld [vmem:[%s2707_s19 + $0x38] sm:$0xff]  ;;  %v347_v59 = vrot.slane %v2923_v38, 1  ;;  %v286_v60 = vrot.slane %v2937_v51, 1  ;;  %v2954_v62 = vsel %vm275_vm0, %v306_v48, %v307_v50  ;;  %v2966_v13 = vld [vmem:[%s2707_s19 + $0x100] sm:$0x3] }
  0x2a   : > { %4209 = vst [vmem:[#allocation18_spill] sm:$0xff] %v2899_v21  ;;  %v287_v61 = vrot.slane %v2940_v52, 1  ;;  %v2957_v63 = vsel %vm275_vm0, %v326_v54, %v327_v57  ;;  %v2969_v15 = vld [vmem:[%s2707_s19 + $0x160] sm:$0x3]  ;;  %v309_v20 = vrot.slane %v2963_v12, 1  ;;  %v2360_v48 = vld [vmem:[%s4116_s1 + $0xd8] sm:$0xff] }
  0x2b   : > { %4210 = vst [vmem:[#allocation19_spill] sm:$0xff] %v2905_v28  ;;  %v2960_v8 = vsel %vm275_vm0, %v346_v58, %v347_v59  ;;  %v2977_v19 = vld [vmem:[%s2707_s19 + $0x40] sm:$0x3]  ;;  %v2396_v53 = vld [vmem:[%s4116_s1 + $0xf8] sm:$0xff]  ;;  %v329_v58 = vrot.slane %v2966_v13, 1  ;;  %1509 = vmatpush.msra.mxu2 %v2360_v48  ;;  %v3011_v48 = vld [vmem:[%s2707_s19 + $0xb0] sm:$0xff] }
  0x2c   : > { %4211 = vst [vmem:[#allocation20_spill] sm:$0xff] %v2920_v37  ;;  %v2974_v18 = vsel %vm275_vm0, %v286_v60, %v287_v61  ;;  %v2324_v54 = vld [vmem:[%s4116_s1 + $0xb8] sm:$0xff]  ;;  %v349_v60 = vrot.slane %v2969_v15, 1  ;;  %1669 = vmatpush.msra.mxu3 %v2396_v53  ;;  %v3014_v53 = vld [vmem:[%s2707_s19 + $0x108] sm:$0xff]  ;;  %v3023_v49 = vld [vmem:[%s2707_s19 + $0x170] sm:$0xff] }
  0x2d   : > { %4212 = vst [vmem:[#allocation21_spill] sm:$0xff] %v2923_v38  ;;  %1353 = vmatpush.msra.mxu1 %v2324_v54  ;;  %v289_v38 = vrot.slane %v2977_v19, 1  ;;  %v3002_v5 = vsel %vm275_vm0, %v327_v57, %v329_v58  ;;  %v3017_v54 = vld [vmem:[%s2707_s19 + $0x110] sm:$0xff] }
  0x2e   : > { %2159 = vmatmul.msk.f32.gmra.mxu1 %vm361_vm1, %v2854_v0  ;;  %4213 = vst [vmem:[#allocation22_spill] sm:$0xff] %v2954_v62  ;;  %v3005_v37 = vsel %vm275_vm0, %v347_v59, %v349_v60  ;;  %v312_v59 = vrot.slane %v3011_v48, 1  ;;  %v3040_v58 = vld [vmem:[%s2707_s19 + $0x50] sm:$0xff]  ;;  %v332_v60 = vrot.slane %v3017_v54, 1 }
  0x2f   : > { %2167 = vmatmul.msk.f32.gmra.mxu2 %vm361_vm1, %v2857_v1  ;;  %4214 = vst [vmem:[#allocation23_spill] sm:$0xff] %v2960_v8  ;;  %v292_v47 = vrot.slane %v3040_v58, 1 }
  0x30   : > { %2175 = vmatmul.msk.f32.gmra.mxu3 %vm361_vm1, %v2860_v2  ;;  %4215 = vst [vmem:[#allocation24_spill] sm:$0xff] %v2966_v13  ;;  %v352_v2 = vrot.slane %v3023_v49, 1 }
  0x31   : > { %2151 = vmatmul.msk.f32.gmra.mxu0 %vm361_vm1, %v2874_v6  ;;  %4216 = vst [vmem:[#allocation25_spill] sm:$0xff] %v2969_v15  ;;  %v3008_v15 = vld [vmem:[%s2707_s19 + $0xa8] sm:$0xff] }
  0x32   : > { %4218 = vst [vmem:[#allocation27_spill] sm:$0xff] %v3005_v37  ;;  %v311_v57 = vrot.slane %v3008_v15, 1 }
  0x33   : > { %4219 = vst [vmem:[#allocation28_spill] sm:$0xff] %v3017_v54 }
  0x34   : > { %4221 = vst [vmem:[#allocation30_spill] sm:$0xff] %v3023_v49  ;;  %v3054_v45 = vsel %vm275_vm0, %v311_v57, %v312_v59  ;;  %v3066_v49 = vld [vmem:[%s2707_s19 + $0x118] sm:$0x3] }
  0x35   : > { %4222 = vst [vmem:[#allocation31_spill] sm:$0xff] %v3054_v45  ;;  %v3082_v57 = vld [vmem:[%s2707_s19 + $0x58] sm:$0x3] }
  0x36   : > { %2160 = vmatmul.msk.f32.gmra.mxu1 %vm361_vm1, %v2899_v21  ;;  %4225 = vst [vmem:[#allocation34_spill] sm:$0xff] %v3066_v49 }
  0x37   : > { %2168 = vmatmul.msk.f32.gmra.mxu2 %vm361_vm1, %v2902_v27 }
  0x38   : > { %2176 = vmatmul.msk.f32.gmra.mxu3 %vm361_vm1, %v2905_v28  ;;  %v3020_v28 = vld [vmem:[%s2707_s19 + $0x168] sm:$0xff] }
  0x39   : > { %2152 = vmatmul.msk.f32.gmra.mxu0 %vm361_vm1, %v2928_v39  ;;  %4220 = vst [vmem:[#allocation29_spill] sm:$0xff] %v3020_v28 }
  0x3e   : > { %2161 = vmatmul.msk.f32.gmra.mxu1 %vm361_vm1, %v2954_v62 }
  0x3f   : > { %2169 = vmatmul.msk.f32.gmra.mxu2 %vm361_vm1, %v2957_v63 }
  0x40   : > { %2177 = vmatmul.msk.f32.gmra.mxu3 %vm361_vm1, %v2960_v8  ;;  %v2999_v8 = vsel %vm275_vm0, %v307_v50, %v309_v20  ;;  %v3028_v50 = vsel %vm275_vm0, %v287_v61, %v289_v38  ;;  %v3037_v20 = vld [vmem:[%s2707_s19 + $0x48] sm:$0xff]  ;;  %v2432_v38 = vld [vmem:[%s4116_s1 + $0x118] sm:$0xff]  ;;  %v331_v61 = vrot.slane %v3014_v53, 1 }
  0x41   : > { %2153 = vmatmul.msk.f32.gmra.mxu0 %vm361_vm1, %v2974_v18  ;;  %4217 = vst [vmem:[#allocation26_spill] sm:$0xff] %v2999_v8  ;;  %v291_v32 = vrot.slane %v3037_v20, 1 }
  0x42   : > { %1828 = vmatpush.msra.mxu0 %v2432_v38  ;;  %v3057_v17 = vsel %vm275_vm0, %v331_v61, %v332_v60  ;;  %v3069_v38 = vld [vmem:[%s2707_s19 + $0x178] sm:$0x3]  ;;  %v334_v61 = vrot.slane %v3066_v49, 1 }
  0x43   : > { %4223 = vst [vmem:[#allocation32_spill] sm:$0xff] %v3057_v17  ;;  %v3074_v16 = vsel %vm275_vm0, %v291_v32, %v292_v47  ;;  %v354_v54 = vrot.slane %v3069_v38, 1  ;;  %v294_v32 = vrot.slane %v3082_v57, 1 }
  0x45   : > { %v3101_v49 = vsel %vm275_vm0, %v292_v47, %v294_v32  ;;  %v720_v47 = vrot.slane %v2782_v34, 2  ;;  %v730_v32 = vrot.slane %v2977_v19, 2  ;;  %v2431_v19 = vld [vmem:[%s4116_s1 + $0x110] sm:$0xff] }
  0x46   : > { %2162 = vmatmul.msk.f32.gmra.mxu1 %vm361_vm1, %v2999_v8  ;;  %1829 = vmatpush.msra.mxu0 %v2431_v19 }
  0x47   : > { %2170 = vmatmul.msk.f32.gmra.mxu2 %vm361_vm1, %v3002_v5 }
  0x48   : > { %2178 = vmatmul.msk.f32.gmra.mxu3 %vm361_vm1, %v3005_v37  ;;  %v351_v37 = vrot.slane %v3020_v28, 1  ;;  %v3063_v28 = vld [vmem:[%s2707_s19 + $0xb8] sm:$0x3] }
  0x49   : > { %2154 = vmatmul.msk.f32.gmra.mxu0 %vm361_vm1, %v3028_v50 }
  0x4a   : > { %v3060_v30 = vsel %vm275_vm0, %v351_v37, %v352_v2  ;;  %v314_v37 = vrot.slane %v3063_v28, 1 }
  0x4b   : > { %4224 = vst [vmem:[#allocation33_spill] sm:$0xff] %v3060_v30 }
  0x4c   : > { %v3090_v13 = vsel %vm275_vm0, %v312_v59, %v314_v37  ;;  %v717_v59 = vrot.slane %v2749_v23, 2  ;;  %v723_v37 = vrot.slane %v2841_v56, 2 }
  0x4d   : > { %4226 = vst [vmem:[#allocation35_spill] sm:$0xff] %v3090_v13 }
  0x4e   : > { %2163 = vmatmul.msk.f32.gmra.mxu1 %vm361_vm1, %v3054_v45 }
  0x4f   : > { %2171 = vmatmul.msk.f32.gmra.mxu2 %vm361_vm1, %v3057_v17  ;;  %v3093_v17 = vsel %vm275_vm0, %v332_v60, %v334_v61  ;;  %v718_v60 = vrot.slane %v2758_v26, 2  ;;  %v2395_v61 = vld [vmem:[%s4116_s1 + $0xf0] sm:$0xff] }
  0x50   : > { %2179 = vmatmul.msk.f32.gmra.mxu3 %vm361_vm1, %v3060_v30  ;;  %v3096_v30 = vsel %vm275_vm0, %v352_v2, %v354_v54 }
  0x51   : > { %2155 = vmatmul.msk.f32.gmra.mxu0 %vm361_vm1, %v3074_v16  ;;  %4227 = vst [vmem:[#allocation36_spill] sm:$0xff] %v3096_v30  ;;  %v719_v2 = vsel %vm716_vm2, %v717_v59, %v718_v60  ;;  %v721_v54 = vsel %vm716_vm2, %v718_v60, %v720_v47  ;;  %1670 = vmatpush.msra.mxu3 %v2395_v61  ;;  %v2323_v59 = vld [vmem:[%s4116_s1 + $0xb0] sm:$0xff]  ;;  %v733_v47 = vrot.slane %v3040_v58, 2  ;;  %v740_v61 = vrot.slane %v2746_v22, 2 }
  0x52   : > { %1354 = vmatpush.msra.mxu1 %v2323_v59  ;;  %v742_v22 = vrot.slane %v2796_v41, 2 }
  0x56   : > { %2164 = vmatmul.msk.f32.gmra.mxu1 %vm361_vm1, %v3090_v13 }
  0x57   : > { %2172 = vmatmul.msk.f32.gmra.mxu2 %vm361_vm1, %v3093_v17 }
  0x58   : > { %2180 = vmatmul.msk.f32.gmra.mxu3 %vm361_vm1, %v3096_v30 }
  0x59   : > { %2156 = vmatmul.msk.f32.gmra.mxu0 %vm361_vm1, %v3101_v49 }
  0x5e   : > { %2181 = vmatmul.msk.f32.vlgmr.msrb.gmra.mxu1 %vm361_vm1, %v2749_v23  ;;  %v722_v23 = vrot.slane %v2838_v55, 2 }
  0x5f   : > { %2217 = vmatmul.msk.f32.vlgmr.msrb.gmra.mxu2 %vm361_vm1, %v719_v2  ;;  %v732_v2 = vrot.slane %v3037_v20, 2 }
  0x60   : > { %2253 = vmatmul.msk.f32.vlgmr.msrb.gmra.mxu3 %vm361_vm1, %v2838_v55  ;;  %v3131_v34 = vsel %vm716_vm2, %v722_v23, %v723_v37  ;;  %v735_v23 = vrot.slane %v3082_v57, 2 }
  0x61   : > { %2289 = vmatmul.msk.f32.vlgmr.msrb.gmra.mxu0 %vm361_vm1, %v2874_v6 }
  0x66   : > { %2182 = vmatmul.msk.f32.gmra.mxu1 %vm361_vm1, %v2758_v26  ;;  %v725_v26 = vrot.slane %v2877_v7, 2 }
  0x67   : > { %2218 = vmatmul.msk.f32.gmra.mxu2 %vm361_vm1, %v721_v54  ;;  %v3193_v54 = vsel %vm716_vm2, %v732_v2, %v733_v47 }
  0x68   : > { %2254 = vmatmul.msk.f32.gmra.mxu3 %vm361_vm1, %v2841_v56  ;;  %v3143_v6 = vsel %vm716_vm2, %v723_v37, %v725_v26  ;;  %v3205_v37 = vsel %vm716_vm2, %v733_v47, %v735_v23  ;;  %v737_v26 = vrot.slane %v2719_v9, 2  ;;  %v743_v47 = vrot.slane %v2799_v42, 2 }
  0x69   : > { %2290 = vmatmul.msk.f32.gmra.mxu0 %vm361_vm1, %v2928_v39  ;;  %v728_v39 = vrot.slane %v2940_v52, 2 }
  0x6b   : > { %v3177_v60 = vsel %vm716_vm2, %v728_v39, %v730_v32 }
  0x6e   : > { %2183 = vmatmul.msk.f32.gmra.mxu1 %vm361_vm1, %v2838_v55  ;;  %v727_v55 = vrot.slane %v2937_v51, 2 }
  0x6f   : > { %2219 = vmatmul.msk.f32.gmra.mxu2 %vm361_vm1, %v3131_v34 }
  0x70   : > { %2255 = vmatmul.msk.f32.gmra.mxu3 %vm361_vm1, %v2937_v51  ;;  %v3156_v7 = vsel %vm716_vm2, %v727_v55, %v728_v39  ;;  %v738_v55 = vrot.slane %v2722_v10, 2 }
  0x71   : > { %2291 = vmatmul.msk.f32.gmra.mxu0 %vm361_vm1, %v2974_v18 }
  0x72   : > { %v3220_v39 = vsel %vm716_vm2, %v737_v26, %v738_v55 }
  0x73   : > { %4228 = vst [vmem:[#allocation37_spill] sm:$0xff] %v3220_v39 }
  0x76   : > { %2184 = vmatmul.msk.f32.gmra.mxu1 %vm361_vm1, %v2841_v56  ;;  %v2359_v56 = vld [vmem:[%s4116_s1 + $0xd0] sm:$0xff] }
  0x77   : > { %2220 = vmatmul.msk.f32.gmra.mxu2 %vm361_vm1, %v3143_v6 }
  0x78   : > { %2256 = vmatmul.msk.f32.gmra.mxu3 %vm361_vm1, %v2940_v52  ;;  %1510 = vmatpush.msra.mxu2 %v2359_v56 }
  0x79   : > { %2292 = vmatmul.msk.f32.gmra.mxu0 %vm361_vm1, %v3028_v50 }
  0x7e   : > { %2185 = vmatmul.msk.f32.gmra.mxu1 %vm361_vm1, %v2937_v51 }
  0x7f   : > { %2221 = vmatmul.msk.f32.gmra.mxu2 %vm361_vm1, %v3156_v7 }
  0x80   : > { %2257 = vmatmul.msk.f32.gmra.mxu3 %vm361_vm1, %v3037_v20 }
  0x81   : > { %2293 = vmatmul.msk.f32.gmra.mxu0 %vm361_vm1, %v3074_v16 }
  0x86   : > { %2186 = vmatmul.msk.f32.gmra.mxu1 %vm361_vm1, %v2940_v52 }
  0x87   : > { %2222 = vmatmul.msk.f32.gmra.mxu2 %vm361_vm1, %v3177_v60 }
  0x88   : > { %2258 = vmatmul.msk.f32.gmra.mxu3 %vm361_vm1, %v3040_v58 }
  0x89   : > { %2294 = vmatmul.msk.f32.gmra.mxu0 %vm361_vm1, %v3101_v49 }
  0x8e   : > { %2187 = vmatmul.msk.f32.gmra.mxu1 %vm361_vm1, %v3037_v20 }
  0x8f   : > { %2223 = vmatmul.msk.f32.gmra.mxu2 %vm361_vm1, %v3193_v54 }
  0x90   : > { %2259 = vmatmul.msk.f32.gmra.mxu3 %vm361_vm1, %v2719_v9 }
  0x91   : > { %2295 = vmatmul.msk.f32.gmra.mxu0 %vm361_vm1, %v2752_v24 }
  0x96   : > { %2188 = vmatmul.msk.f32.gmra.mxu1 %vm361_vm1, %v3040_v58 }
  0x97   : > { %2224 = vmatmul.msk.f32.gmra.mxu2 %vm361_vm1, %v3205_v37 }
  0x98   : > { %2260 = vmatmul.msk.f32.gmra.mxu3 %vm361_vm1, %v2722_v10 }
  0x99   : > { %2296 = vmatmul.msk.f32.gmra.mxu0 %vm361_vm1, %v2793_v40 }
  0x9b   : > { %v3217_v57 = vpop.f32.mrf.mxu1 }
  0x9e   : > { %2189 = vmatmul.msk.f32.gmra.mxu1 %vm361_vm1, %v2719_v9  ;;  %v3224_v56 = vpop.f32.mrf.mxu0  ;;  %v3240_v9 = vsel %vm716_vm2, %v738_v55, %v740_v61  ;;  %v3261_v55 = vsel %vm716_vm2, %v742_v22, %v743_v47 }
  0x9f   : > { %2225 = vmatmul.msk.f32.gmra.mxu2 %vm361_vm1, %v3220_v39  ;;  %4230 = vst [vmem:[#allocation39_spill] sm:$0xff] %v3240_v9 }
  0xa0   : > { %2261 = vmatmul.msk.f32.gmra.mxu3 %vm361_vm1, %v2796_v41  ;;  %4232 = vst [vmem:[#allocation41_spill] sm:$0xff] %v3261_v55 }
  0xa1   : > { %2297 = vmatmul.msk.f32.gmra.mxu0 %vm361_vm1, %v2854_v0 }
  0xa2   : > { %v3233_v32 = vpop.f32.mrf.mxu2 }
  0xa3   : > { %v3235_v59 = vpop.f32.mrf.mxu3  ;;  %v3237_v19 = vpop.f32.mrf.mxu1 }
  0xa4   : > { %4229 = vst [vmem:[#allocation38_spill] sm:$0xff] %v3235_v59  ;;  %v745_v59 = vrot.slane %v2863_v3, 2  ;;  %v747_v3 = vrot.slane %v2908_v31, 2 }
  0xa6   : > { %2190 = vmatmul.msk.f32.gmra.mxu1 %vm361_vm1, %v2722_v10  ;;  %v3244_v2 = vpop.f32.mrf.mxu0 }
  0xa7   : > { %2226 = vmatmul.msk.f32.gmra.mxu2 %vm361_vm1, %v3240_v9  ;;  %v2322_v9 = vld [vmem:[%s4116_s1 + $0xa8] sm:$0xff] }
  0xa8   : > { %2262 = vmatmul.msk.f32.gmra.mxu3 %vm361_vm1, %v2799_v42  ;;  %1355 = vmatpush.msra.mxu1 %v2322_v9 }
  0xa9   : > { %2298 = vmatmul.msk.f32.gmra.mxu0 %vm361_vm1, %v2899_v21 }
  0xaa   : > { %v3254_v23 = vpop.f32.mrf.mxu2 }
  0xab   : > { %v3256_v26 = vpop.f32.mrf.mxu3  ;;  %v3258_v10 = vpop.f32.mrf.mxu1 }
  0xac   : > { %4231 = vst [vmem:[#allocation40_spill] sm:$0xff] %v3256_v26 }
  0xae   : > { %2191 = vmatmul.msk.f32.gmra.mxu1 %vm361_vm1, %v2796_v41  ;;  %v3265_v61 = vpop.f32.mrf.mxu0  ;;  %v3281_v41 = vsel %vm716_vm2, %v743_v47, %v745_v59 }
  0xaf   : > { %2227 = vmatmul.msk.f32.gmra.mxu2 %vm361_vm1, %v3261_v55  ;;  %4234 = vst [vmem:[#allocation43_spill] sm:$0xff] %v3281_v41 }
  0xb0   : > { %2263 = vmatmul.msk.f32.gmra.mxu3 %vm361_vm1, %v2908_v31 }
  0xb1   : > { %2299 = vmatmul.msk.f32.gmra.mxu0 %vm361_vm1, %v2954_v62 }
  0xb2   : > { %v3274_v26 = vpop.f32.mrf.mxu2 }
  0xb3   : > { %v3276_v22 = vpop.f32.mrf.mxu3  ;;  %v3278_v21 = vpop.f32.mrf.mxu1 }
  0xb4   : > { %4233 = vst [vmem:[#allocation42_spill] sm:$0xff] %v3276_v22  ;;  %v748_v22 = vrot.slane %v2911_v33, 2 }
  0xb6   : > { %2192 = vmatmul.msk.f32.gmra.mxu1 %vm361_vm1, %v2799_v42  ;;  %v3285_v55 = vpop.f32.mrf.mxu0  ;;  %v3302_v62 = vsel %vm716_vm2, %v747_v3, %v748_v22  ;;  %v2394_v3 = vld [vmem:[%s4116_s1 + $0xe8] sm:$0xff] }
  0xb7   : > { %2228 = vmatmul.msk.f32.gmra.mxu2 %vm361_vm1, %v3281_v41  ;;  %4236 = vst [vmem:[#allocation45_spill] sm:$0xff] %v3302_v62  ;;  %1671 = vmatpush.msra.mxu3 %v2394_v3  ;;  %v752_v3 = vrot.slane %v3008_v15, 2 }
  0xb8   : > { %2264 = vmatmul.msk.f32.gmra.mxu3 %vm361_vm1, %v2911_v33 }
  0xb9   : > { %2300 = vmatmul.msk.f32.gmra.mxu0 %vm361_vm1, %v2999_v8  ;;  %v750_v8 = vrot.slane %v2963_v12, 2 }
  0xba   : > { %v3295_v59 = vpop.f32.mrf.mxu2 }
  0xbb   : > { %v3297_v47 = vpop.f32.mrf.mxu3  ;;  %v3299_v42 = vpop.f32.mrf.mxu1  ;;  %v3331_v40 = vsel %vm716_vm2, %v748_v22, %v750_v8  ;;  %v753_v8 = vrot.slane %v3011_v48, 2 }
  0xbc   : > { %4235 = vst [vmem:[#allocation44_spill] sm:$0xff] %v3297_v47  ;;  %v2358_v47 = vld [vmem:[%s4116_s1 + $0xc8] sm:$0xff] }
  0xbd   : > { %1511 = vmatpush.msra.mxu2 %v2358_v47  ;;  %4238 = vst [vmem:[#allocation47_spill] sm:$0xff] %v3331_v40  ;;  %v2430_v47 = vld [vmem:[%s4116_s1 + $0x108] sm:$0xff] }
  0xbe   : > { %2193 = vmatmul.msk.f32.gmra.mxu1 %vm361_vm1, %v2908_v31  ;;  %v3306_v41 = vpop.f32.mrf.mxu0  ;;  %1830 = vmatpush.msra.mxu0 %v2430_v47  ;;  %v755_v47 = vrot.slane %v3063_v28, 2  ;;  %v757_v28 = vrot.slane %v2725_v11, 2 }
  0xbf   : > { %2229 = vmatmul.msk.f32.gmra.mxu2 %vm361_vm1, %v3302_v62 }
  0xc0   : > { %2265 = vmatmul.msk.f32.gmra.mxu3 %vm361_vm1, %v3008_v15 }
  0xc1   : > { %2301 = vmatmul.msk.f32.gmra.mxu0 %vm361_vm1, %v3054_v45 }
  0xc2   : > { %v3321_v31 = vpop.f32.mrf.mxu2 }
  0xc3   : > { %v3323_v62 = vpop.f32.mrf.mxu3  ;;  %v3325_v0 = vpop.f32.mrf.mxu1 }
  0xc4   : > { %4237 = vst [vmem:[#allocation46_spill] sm:$0xff] %v3323_v62  ;;  %v3355_v62 = vsel %vm716_vm2, %v752_v3, %v753_v8 }
  0xc5   : > { %4241 = vst [vmem:[#allocation50_spill] sm:$0xff] %v3355_v62 }
  0xc6   : > { %2194 = vmatmul.msk.f32.gmra.mxu1 %vm361_vm1, %v2911_v33  ;;  %v3335_v12 = vpop.f32.mrf.mxu0 }
  0xc7   : > { %2230 = vmatmul.msk.f32.gmra.mxu2 %vm361_vm1, %v3331_v40 }
  0xc8   : > { %2266 = vmatmul.msk.f32.gmra.mxu3 %vm361_vm1, %v3011_v48 }
  0xc9   : > { %2302 = vmatmul.msk.f32.gmra.mxu0 %vm361_vm1, %v3090_v13 }
  0xca   : > { %v3348_v33 = vpop.f32.mrf.mxu2 }
  0xcb   : > { %4239 = vst [vmem:[#allocation48_spill] sm:$0xff] %v3348_v33  ;;  %v3350_v9 = vpop.f32.mrf.mxu3  ;;  %v3352_v22 = vpop.f32.mrf.mxu1 }
  0xcc   : > { %4240 = vst [vmem:[#allocation49_spill] sm:$0xff] %v3350_v9 }
  0xce   : > { %2195 = vmatmul.msk.f32.gmra.mxu1 %vm361_vm1, %v3008_v15  ;;  %v3359_v45 = vpop.f32.mrf.mxu0  ;;  %v3375_v15 = vsel %vm716_vm2, %v753_v8, %v755_v47 }
  0xcf   : > { %2231 = vmatmul.msk.f32.gmra.mxu2 %vm361_vm1, %v3355_v62  ;;  %4244 = vst [vmem:[#allocation53_spill] sm:$0xff] %v3375_v15 }
  0xd0   : > { %2267 = vmatmul.msk.f32.gmra.mxu3 %vm361_vm1, %v2725_v11 }
  0xd1   : > { %2303 = vmatmul.msk.f32.gmra.mxu0 %vm361_vm1, %v2767_v29 }
  0xd2   : > { %v3368_v9 = vpop.f32.mrf.mxu2 }
  0xd3   : > { %4242 = vst [vmem:[#allocation51_spill] sm:$0xff] %v3368_v9  ;;  %v3370_v3 = vpop.f32.mrf.mxu3  ;;  %v3372_v13 = vpop.f32.mrf.mxu1 }
  0xd4   : > { %4243 = vst [vmem:[#allocation52_spill] sm:$0xff] %v3370_v3  ;;  %v758_v3 = vrot.slane %v2730_v14, 2 }
  0xd6   : > { %2196 = vmatmul.msk.f32.gmra.mxu1 %vm361_vm1, %v3011_v48  ;;  %v3379_v62 = vpop.f32.mrf.mxu0  ;;  %v3394_v29 = vsel %vm716_vm2, %v757_v28, %v758_v3 }
  0xd7   : > { %2232 = vmatmul.msk.f32.gmra.mxu2 %vm361_vm1, %v3375_v15  ;;  %4247 = vst [vmem:[#allocation56_spill] sm:$0xff] %v3394_v29 }
  0xd8   : > { %2268 = vmatmul.msk.f32.gmra.mxu3 %vm361_vm1, %v2730_v14 }
  0xd9   : > { %2304 = vmatmul.msk.f32.gmra.mxu0 %vm361_vm1, %v2805_v44  ;;  %v760_v44 = vrot.slane %v2755_v25, 2  ;;  %v762_v25 = vrot.slane %v2802_v43, 2 }
  0xda   : > { %v3389_v8 = vpop.f32.mrf.mxu2 }
  0xdb   : > { %4245 = vst [vmem:[#allocation54_spill] sm:$0xff] %v3389_v8  ;;  %v3391_v47 = vpop.f32.mrf.mxu3  ;;  %v620_v48 = vpop.f32.mrf.mxu1 }
  0xdc   : > { %4246 = vst [vmem:[#allocation55_spill] sm:$0xff] %v3391_v47  ;;  %v621_v40 = vadd.f32 %v620_v48, %v3224_v56 }
  0xde   : > { %2197 = vmatmul.msk.f32.gmra.mxu1 %vm361_vm1, %v2725_v11  ;;  %v1199_v15 = vpop.f32.mrf.mxu0  ;;  %v3407_v11 = vsel %vm716_vm2, %v758_v3, %v760_v44 }
  0xdf   : > { %2233 = vmatmul.msk.f32.gmra.mxu2 %vm361_vm1, %v3394_v29 }
  0xe0   : > { %2269 = vmatmul.msk.f32.gmra.mxu3 %vm361_vm1, %v2802_v43 }
  0xe1   : > { %2305 = vmatmul.msk.f32.gmra.mxu0 %vm361_vm1, %v2857_v1 }
  0xe2   : > { %v883_v47 = vpop.f32.mrf.mxu2 }
  0xe3   : > { %v1039_v28 = vpop.f32.mrf.mxu3  ;;  %v979_v8 = vadd.f32 %v883_v47, %v621_v40  ;;  %v623_v9 = vpop.f32.mrf.mxu1  ;;  %v763_v40 = vrot.slane %v2811_v46, 2 }
  0xe4   : > { %v624_v44 = vadd.f32 %v623_v9, %v3244_v2  ;;  %v765_v2 = vrot.slane %v2866_v4, 2  ;;  %v767_v4 = vrot.slane %v2914_v35, 2 }
  0xe5   : > { %v1135_v33 = vadd.f32 %v1039_v28, %v979_v8 }
  0xe6   : > { %2198 = vmatmul.msk.f32.gmra.mxu1 %vm361_vm1, %v2730_v14  ;;  %v1202_v29 = vpop.f32.mrf.mxu0 }
  0xe7   : > { %v3411_v39 = vadd.f32 %v1199_v15, %v1135_v33  ;;  %2234 = vmatmul.msk.f32.gmra.mxu2 %vm361_vm1, %v3407_v11  ;;  %v3423_v15 = vsel %vm716_vm2, %v762_v25, %v763_v40 }
  0xe8   : > { %2270 = vmatmul.msk.f32.gmra.mxu3 %vm361_vm1, %v2811_v46 }
  0xe9   : > { %2306 = vmatmul.msk.f32.gmra.mxu0 %vm361_vm1, %v2902_v27 }
  0xea   : > { %v886_v56 = vpop.f32.mrf.mxu2 }
  0xeb   : > { %v1042_v14 = vpop.f32.mrf.mxu3  ;;  %v980_v3 = vadd.f32 %v886_v56, %v624_v44  ;;  %v626_v33 = vpop.f32.mrf.mxu1 }
  0xec   : > { %v627_v9 = vadd.f32 %v626_v33, %v3265_v61  ;;  %v768_v61 = vrot.slane %v2917_v36, 2 }
  0xed   : > { %v1136_v8 = vadd.f32 %v1042_v14, %v980_v3 }
  0xee   : > { %2199 = vmatmul.msk.f32.gmra.mxu1 %vm361_vm1, %v2802_v43  ;;  %v1205_v47 = vpop.f32.mrf.mxu0 }
  0xef   : > { %v3427_v48 = vadd.f32 %v1202_v29, %v1136_v8  ;;  %2235 = vmatmul.msk.f32.gmra.mxu2 %vm361_vm1, %v3423_v15  ;;  %v3438_v29 = vsel %vm716_vm2, %v763_v40, %v765_v2  ;;  %v3454_v2 = vsel %vm716_vm2, %v767_v4, %v768_v61 }
  0xf0   : > { %2271 = vmatmul.msk.f32.gmra.mxu3 %vm361_vm1, %v2914_v35 }
  0xf1   : > { %2307 = vmatmul.msk.f32.gmra.mxu0 %vm361_vm1, %v2957_v63 }
  0xf2   : > { %v889_v28 = vpop.f32.mrf.mxu2 }
  0xf3   : > { %v1045_v25 = vpop.f32.mrf.mxu3  ;;  %v981_v44 = vadd.f32 %v889_v28, %v627_v9  ;;  %v629_v43 = vpop.f32.mrf.mxu1 }
  0xf4   : > { %v630_v40 = vadd.f32 %v629_v43, %v3285_v55  ;;  %v2357_v55 = vld [vmem:[%s4116_s1 + $0xc0] sm:$0xff]  ;;  %v4249_v43 = vld [vmem:[#allocation24_spill] sm:$0xff] }
  0xf5   : > { %v1137_v56 = vadd.f32 %v1045_v25, %v981_v44  ;;  %v2393_v44 = vld [vmem:[%s4116_s1 + $0xe0] sm:$0xff]  ;;  %1512 = vmatpush.msra.mxu2 %v2357_v55  ;;  %v4252_v55 = vld [vmem:[#allocation28_spill] sm:$0xff] }
  0xf6   : > { %2200 = vmatmul.msk.f32.gmra.mxu1 %vm361_vm1, %v2811_v46  ;;  %v1208_v14 = vpop.f32.mrf.mxu0  ;;  %1672 = vmatpush.msra.mxu3 %v2393_v44  ;;  %v2429_v44 = vld [vmem:[%s4116_s1 + $0x100] sm:$0xff] }
  0xf7   : > { %v3442_v3 = vadd.f32 %v1205_v47, %v1137_v56  ;;  %2236 = vmatmul.msk.f32.gmra.mxu2 %vm361_vm1, %v3438_v29  ;;  %v770_v56 = vrot.slane %v4249_v43, 2  ;;  %1831 = vmatpush.msra.mxu0 %v2429_v44 }
  0xf8   : > { %2272 = vmatmul.msk.f32.gmra.mxu3 %vm361_vm1, %v2917_v36 }
  0xf9   : > { %2308 = vmatmul.msk.f32.gmra.mxu0 %vm361_vm1, %v3002_v5 }
  0xfa   : > { %v892_v33 = vpop.f32.mrf.mxu2 }
  0xfb   : > { %v1048_v46 = vpop.f32.mrf.mxu3  ;;  %v982_v8 = vadd.f32 %v892_v33, %v630_v40  ;;  %v632_v47 = vpop.f32.mrf.mxu1 }
  0xfd   : > { %v1138_v9 = vadd.f32 %v1048_v46, %v982_v8  ;;  %v2321_v8 = vld [vmem:[%s4116_s1 + $0xa0] sm:$0xff] }
  0xfe   : > { %2201 = vmatmul.msk.f32.gmra.mxu1 %vm361_vm1, %v2914_v35  ;;  %v1211_v28 = vpop.f32.mrf.mxu0  ;;  %v633_v35 = vadd.f32 %v632_v47, %v3306_v41 }
  0xff   : > { %v3458_v25 = vadd.f32 %v1208_v14, %v1138_v9  ;;  %2237 = vmatmul.msk.f32.gmra.mxu2 %vm361_vm1, %v3454_v2  ;;  %v4250_v14 = vld [vmem:[#allocation32_spill] sm:$0xff]  ;;  %v3478_v9 = vsel %vm716_vm2, %v768_v61, %v770_v56  ;;  %1356 = vmatpush.msra.mxu1 %v2321_v8  ;;  %v772_v61 = vrot.slane %v3014_v53, 2  ;;  %v773_v56 = vrot.slane %v4252_v55, 2 }
 0x100   : > { %2273 = vmatmul.msk.f32.gmra.mxu3 %vm361_vm1, %v3014_v53 }
 0x101   : > { %4248 = vst [vmem:[#allocation57_spill] sm:$0xff] %v3458_v25  ;;  %2309 = vmatmul.msk.f32.gmra.mxu0 %vm361_vm1, %v4250_v14 }
 0x102   : > { %v895_v4 = vpop.f32.mrf.mxu2 }
 0x103   : > { %v1051_v40 = vpop.f32.mrf.mxu3  ;;  %v983_v33 = vadd.f32 %v895_v4, %v633_v35  ;;  %v635_v46 = vpop.f32.mrf.mxu1 }
 0x105   : > { %v1139_v43 = vadd.f32 %v1051_v40, %v983_v33  ;;  %v3497_v33 = vsel %vm716_vm2, %v772_v61, %v773_v56 }
 0x106   : > { %2202 = vmatmul.msk.f32.gmra.mxu1 %vm361_vm1, %v2917_v36  ;;  %v1214_v41 = vpop.f32.mrf.mxu0  ;;  %v636_v36 = vadd.f32 %v635_v46, %v3335_v12  ;;  %v4254_v12 = vld [vmem:[#allocation5_spill] sm:$0xff]  ;;  %v4255_v46 = vld [vmem:[#allocation34_spill] sm:$0xff] }
 0x107   : > { %v3482_v47 = vadd.f32 %v1211_v28, %v1139_v43  ;;  %2238 = vmatmul.msk.f32.gmra.mxu2 %vm361_vm1, %v3478_v9  ;;  %v775_v44 = vrot.slane %v4255_v46, 2 }
 0x108   : > { %2274 = vmatmul.msk.f32.gmra.mxu3 %vm361_vm1, %v4252_v55 }
 0x109   : > { %4251 = vst [vmem:[#allocation24_spill] sm:$0xff] %v3482_v47  ;;  %2310 = vmatmul.msk.f32.gmra.mxu0 %vm361_vm1, %v3093_v17 }
 0x10a   : > { %v898_v28 = vpop.f32.mrf.mxu2 }
 0x10b   : > { %v1054_v35 = vpop.f32.mrf.mxu3  ;;  %v984_v4 = vadd.f32 %v898_v28, %v636_v36  ;;  %v638_v40 = vpop.f32.mrf.mxu1  ;;  %v4256_v28 = vld [vmem:[#allocation8_spill] sm:$0xff] }
 0x10c   : > { %v639_v36 = vadd.f32 %v638_v40, %v3359_v45  ;;  %v4258_v45 = vld [vmem:[#allocation6_spill] sm:$0xff]  ;;  %v777_v40 = vrot.slane %v4254_v12, 2 }
 0x10d   : > { %v1140_v8 = vadd.f32 %v1054_v35, %v984_v4  ;;  %v778_v46 = vrot.slane %v4258_v45, 2 }
 0x10e   : > { %2203 = vmatmul.msk.f32.gmra.mxu1 %vm361_vm1, %v3014_v53  ;;  %v1217_v43 = vpop.f32.mrf.mxu0 }
 0x10f   : > { %v3501_v47 = vadd.f32 %v1214_v41, %v1140_v8  ;;  %2239 = vmatmul.msk.f32.gmra.mxu2 %vm361_vm1, %v3497_v33  ;;  %v3512_v41 = vsel %vm716_vm2, %v773_v56, %v775_v44  ;;  %v4259_v44 = vld [vmem:[#allocation12_spill] sm:$0xff] }
 0x110   : > { %2275 = vmatmul.msk.f32.gmra.mxu3 %vm361_vm1, %v4254_v12 }
 0x111   : > { %4253 = vst [vmem:[#allocation32_spill] sm:$0xff] %v3501_v47  ;;  %2311 = vmatmul.msk.f32.gmra.mxu0 %vm361_vm1, %v4256_v28 }
 0x112   : > { %v901_v61 = vpop.f32.mrf.mxu2 }
 0x113   : > { %v1057_v35 = vpop.f32.mrf.mxu3  ;;  %v985_v4 = vadd.f32 %v901_v61, %v639_v36  ;;  %v641_v53 = vpop.f32.mrf.mxu1 }
 0x114   : > { %v642_v56 = vadd.f32 %v641_v53, %v3379_v62  ;;  %v4262_v62 = vld [vmem:[#allocation13_spill] sm:$0xff] }
 0x115   : > { %v1141_v8 = vadd.f32 %v1057_v35, %v985_v4  ;;  %v3528_v35 = vsel %vm716_vm2, %v777_v40, %v778_v46  ;;  %v4263_v53 = vld [vmem:[#allocation9_spill] sm:$0xff] }
 0x116   : > { %2204 = vmatmul.msk.f32.gmra.mxu1 %vm361_vm1, %v4252_v55  ;;  %v1220_v47 = vpop.f32.mrf.mxu0  ;;  %4260 = vst [vmem:[#allocation5_spill] sm:$0xff] %v3528_v35 }
 0x117   : > { %v3516_v25 = vadd.f32 %v1217_v43, %v1141_v8  ;;  %2240 = vmatmul.msk.f32.gmra.mxu2 %vm361_vm1, %v3512_v41 }
 0x118   : > { %2276 = vmatmul.msk.f32.gmra.mxu3 %vm361_vm1, %v4258_v45 }
 0x119   : > { %4257 = vst [vmem:[#allocation28_spill] sm:$0xff] %v3516_v25  ;;  %2312 = vmatmul.msk.f32.gmra.mxu0 %vm361_vm1, %v4259_v44  ;;  %v780_v44 = vrot.slane %v4263_v53, 2 }
 0x11a   : > { %v904_v36 = vpop.f32.mrf.mxu2 }
 0x11b   : > { %v1060_v55 = vpop.f32.mrf.mxu3  ;;  %v986_v61 = vadd.f32 %v904_v36, %v642_v56  ;;  %v644_v43 = vpop.f32.mrf.mxu1  ;;  %v4264_v36 = vld [vmem:[#allocation16_spill] sm:$0xff] }
 0x11c   : > { %v645_v56 = vadd.f32 %v644_v43, %v3217_v57  ;;  %v4266_v57 = vld [vmem:[#allocation14_spill] sm:$0xff]  ;;  %v782_v43 = vrot.slane %v4262_v62, 2 }
 0x11d   : > { %v1142_v4 = vadd.f32 %v1060_v55, %v986_v61  ;;  %v783_v53 = vrot.slane %v4266_v57, 2 }
 0x11e   : > { %2205 = vmatmul.msk.f32.gmra.mxu1 %vm361_vm1, %v4254_v12  ;;  %v1223_v8 = vpop.f32.mrf.mxu0 }
 0x11f   : > { %v3532_v25 = vadd.f32 %v1220_v47, %v1142_v4  ;;  %2241 = vmatmul.msk.f32.gmra.mxu2 %vm361_vm1, %v3528_v35  ;;  %v3543_v47 = vsel %vm716_vm2, %v778_v46, %v780_v44  ;;  %v4267_v44 = vld [vmem:[#allocation19_spill] sm:$0xff] }
 0x120   : > { %2277 = vmatmul.msk.f32.gmra.mxu3 %vm361_vm1, %v4262_v62 }
 0x121   : > { %4261 = vst [vmem:[#allocation34_spill] sm:$0xff] %v3532_v25  ;;  %2313 = vmatmul.msk.f32.gmra.mxu0 %vm361_vm1, %v4264_v36 }
 0x122   : > { %v907_v40 = vpop.f32.mrf.mxu2 }
 0x123   : > { %v1063_v55 = vpop.f32.mrf.mxu3  ;;  %v987_v61 = vadd.f32 %v907_v40, %v645_v56  ;;  %v647_v12 = vpop.f32.mrf.mxu1 }
 0x124   : > { %v648_v46 = vadd.f32 %v647_v12, %v3237_v19  ;;  %v4270_v19 = vld [vmem:[#allocation20_spill] sm:$0xff]  ;;  %v4271_v12 = vld [vmem:[#allocation17_spill] sm:$0xff] }
 0x125   : > { %v1143_v4 = vadd.f32 %v1063_v55, %v987_v61  ;;  %v3559_v55 = vsel %vm716_vm2, %v782_v43, %v783_v53 }
 0x126   : > { %2206 = vmatmul.msk.f32.gmra.mxu1 %vm361_vm1, %v4258_v45  ;;  %v1226_v25 = vpop.f32.mrf.mxu0  ;;  %4268 = vst [vmem:[#allocation6_spill] sm:$0xff] %v3559_v55 }
 0x127   : > { %v3547_v35 = vadd.f32 %v1223_v8, %v1143_v4  ;;  %2242 = vmatmul.msk.f32.gmra.mxu2 %vm361_vm1, %v3543_v47 }
 0x128   : > { %2278 = vmatmul.msk.f32.gmra.mxu3 %vm361_vm1, %v4266_v57 }
 0x129   : > { %4265 = vst [vmem:[#allocation8_spill] sm:$0xff] %v3547_v35  ;;  %2314 = vmatmul.msk.f32.gmra.mxu0 %vm361_vm1, %v4267_v44  ;;  %v785_v44 = vrot.slane %v4271_v12, 2 }
 0x12a   : > { %v910_v56 = vpop.f32.mrf.mxu2 }
 0x12b   : > { %v1066_v45 = vpop.f32.mrf.mxu3  ;;  %v988_v40 = vadd.f32 %v910_v56, %v648_v46  ;;  %v650_v8 = vpop.f32.mrf.mxu1  ;;  %v4272_v56 = vld [vmem:[#allocation23_spill] sm:$0xff] }
 0x12c   : > { %v651_v46 = vadd.f32 %v650_v8, %v3258_v10  ;;  %v4274_v10 = vld [vmem:[#allocation21_spill] sm:$0xff]  ;;  %v787_v8 = vrot.slane %v4270_v19, 2 }
 0x12d   : > { %v1144_v61 = vadd.f32 %v1066_v45, %v988_v40  ;;  %v788_v12 = vrot.slane %v4274_v10, 2 }
 0x12e   : > { %2207 = vmatmul.msk.f32.gmra.mxu1 %vm361_vm1, %v4262_v62  ;;  %v1229_v4 = vpop.f32.mrf.mxu0 }
 0x12f   : > { %v3563_v35 = vadd.f32 %v1226_v25, %v1144_v61  ;;  %2243 = vmatmul.msk.f32.gmra.mxu2 %vm361_vm1, %v3559_v55  ;;  %v3574_v25 = vsel %vm716_vm2, %v783_v53, %v785_v44  ;;  %v4275_v44 = vld [vmem:[#allocation27_spill] sm:$0xff] }
 0x130   : > { %2279 = vmatmul.msk.f32.gmra.mxu3 %vm361_vm1, %v4270_v19 }
 0x131   : > { %4269 = vst [vmem:[#allocation13_spill] sm:$0xff] %v3563_v35  ;;  %2315 = vmatmul.msk.f32.gmra.mxu0 %vm361_vm1, %v4272_v56 }
 0x132   : > { %v913_v43 = vpop.f32.mrf.mxu2 }
 0x133   : > { %v1069_v45 = vpop.f32.mrf.mxu3  ;;  %v989_v40 = vadd.f32 %v913_v43, %v651_v46  ;;  %v653_v62 = vpop.f32.mrf.mxu1 }
 0x134   : > { %v654_v53 = vadd.f32 %v653_v62, %v3278_v21  ;;  %v4278_v21 = vld [vmem:[#allocation29_spill] sm:$0xff] }
 0x135   : > { %v1145_v61 = vadd.f32 %v1069_v45, %v989_v40  ;;  %v3590_v45 = vsel %vm716_vm2, %v787_v8, %v788_v12  ;;  %v4279_v62 = vld [vmem:[#allocation25_spill] sm:$0xff] }
 0x136   : > { %2208 = vmatmul.msk.f32.gmra.mxu1 %vm361_vm1, %v4266_v57  ;;  %v1232_v35 = vpop.f32.mrf.mxu0  ;;  %4276 = vst [vmem:[#allocation16_spill] sm:$0xff] %v3590_v45  ;;  %v4280_v8 = vld [vmem:[#allocation33_spill] sm:$0xff] }
 0x137   : > { %v3578_v55 = vadd.f32 %v1229_v4, %v1145_v61  ;;  %2244 = vmatmul.msk.f32.gmra.mxu2 %vm361_vm1, %v3574_v25 }
 0x138   : > { %2280 = vmatmul.msk.f32.gmra.mxu3 %vm361_vm1, %v4274_v10 }
 0x139   : > { %4273 = vst [vmem:[#allocation9_spill] sm:$0xff] %v3578_v55  ;;  %2316 = vmatmul.msk.f32.gmra.mxu0 %vm361_vm1, %v4275_v44 }
 0x13a   : > { %v916_v46 = vpop.f32.mrf.mxu2 }
 0x13b   : > { %v1072_v57 = vpop.f32.mrf.mxu3  ;;  %v990_v43 = vadd.f32 %v916_v46, %v654_v53  ;;  %v656_v4 = vpop.f32.mrf.mxu1  ;;  %v790_v53 = vrot.slane %v4279_v62, 2  ;;  %v792_v62 = vrot.slane %v4278_v21, 2 }
 0x13c   : > { %v657_v46 = vadd.f32 %v656_v4, %v3299_v42  ;;  %v4282_v42 = vld [vmem:[#allocation30_spill] sm:$0xff] }
 0x13d   : > { %v1146_v40 = vadd.f32 %v1072_v57, %v990_v43  ;;  %v3616_v4 = vld [vmem:[%s2707_s19 + $0x188] sm:$0xff] }
 0x13e   : > { %2209 = vmatmul.msk.f32.gmra.mxu1 %vm361_vm1, %v4270_v19  ;;  %v1235_v61 = vpop.f32.mrf.mxu0 }
 0x13f   : > { %v3594_v55 = vadd.f32 %v1232_v35, %v1146_v40  ;;  %2245 = vmatmul.msk.f32.gmra.mxu2 %vm361_vm1, %v3590_v45  ;;  %v3605_v40 = vsel %vm716_vm2, %v788_v12, %v790_v53  ;;  %v793_v12 = vrot.slane %v4282_v42, 2 }
 0x140   : > { %2281 = vmatmul.msk.f32.gmra.mxu3 %vm361_vm1, %v4278_v21 }
 0x141   : > { %4277 = vst [vmem:[#allocation14_spill] sm:$0xff] %v3594_v55  ;;  %2317 = vmatmul.msk.f32.gmra.mxu0 %vm361_vm1, %v4280_v8 }
 0x142   : > { %v919_v57 = vpop.f32.mrf.mxu2 }
 0x143   : > { %v1075_v19 = vpop.f32.mrf.mxu3  ;;  %v991_v43 = vadd.f32 %v919_v57, %v657_v46  ;;  %v659_v35 = vpop.f32.mrf.mxu1  ;;  %v3622_v46 = vld [vmem:[%s2707_s19 + $0x180] sm:$0xff]  ;;  %v1169_v57 = vrot.slane %v3616_v4, 1 }
 0x144   : > { %v660_v53 = vadd.f32 %v659_v35, %v3325_v0  ;;  %4283 = vst [vmem:[#allocation17_spill] sm:$0xff] %v3622_v46 }
 0x145   : > { %v1147_v55 = vadd.f32 %v1075_v19, %v991_v43 }
 0x146   : > { %2210 = vmatmul.msk.f32.gmra.mxu1 %vm361_vm1, %v4274_v10  ;;  %v1238_v44 = vpop.f32.mrf.mxu0 }
 0x147   : > { %v3609_v45 = vadd.f32 %v1235_v61, %v1147_v55  ;;  %2246 = vmatmul.msk.f32.gmra.mxu2 %vm361_vm1, %v3605_v40  ;;  %v1168_v61 = vrot.slane %v3622_v46, 1 }
 0x148   : > { %2282 = vmatmul.msk.f32.gmra.mxu3 %vm361_vm1, %v4282_v42 }
 0x149   : > { %4281 = vst [vmem:[#allocation20_spill] sm:$0xff] %v3609_v45  ;;  %2318 = vmatmul.msk.f32.gmra.mxu0 %vm361_vm1, %v3096_v30  ;;  %v3629_v45 = vsel %vm716_vm2, %v792_v62, %v793_v12  ;;  %v3634_v35 = vsel %vm275_vm0, %v1168_v61, %v1169_v57  ;;  %v795_v62 = vrot.slane %v3069_v38, 2 }
 0x14a   : > { %v922_v55 = vpop.f32.mrf.mxu2 }
 0x14b   : > { %v1078_v10 = vpop.f32.mrf.mxu3  ;;  %v992_v19 = vadd.f32 %v922_v55, %v660_v53  ;;  %v662_v43 = vpop.f32.mrf.mxu1  ;;  %v3643_v53 = vld [vmem:[%s2707_s19 + $0x190] sm:$0x3] }
 0x14c   : > { %v663_v55 = vadd.f32 %v662_v43, %v3352_v22 }
 0x14d   : > { %v1148_v8 = vadd.f32 %v1078_v10, %v992_v19  ;;  %v3651_v19 = vsel %vm716_vm2, %v793_v12, %v795_v62 }
 0x14e   : > { %2211 = vmatmul.msk.f32.gmra.mxu1 %vm361_vm1, %v4278_v21  ;;  %v1241_v0 = vpop.f32.mrf.mxu0 }
 0x14f   : > { %v3636_v30 = vadd.f32 %v1238_v44, %v1148_v8  ;;  %2247 = vmatmul.msk.f32.gmra.mxu2 %vm361_vm1, %v3629_v45  ;;  %v1171_v44 = vrot.slane %v3643_v53, 1 }
 0x150   : > { %2283 = vmatmul.msk.f32.gmra.mxu3 %vm361_vm1, %v3622_v46 }
 0x151   : > { %4284 = vst [vmem:[#allocation23_spill] sm:$0xff] %v3636_v30  ;;  %2319 = vmatmul.msk.f32.gmra.mxu0 %vm361_vm1, %v3634_v35  ;;  %v3656_v38 = vsel %vm275_vm0, %v1169_v57, %v1171_v44 }
 0x152   : > { %v925_v21 = vpop.f32.mrf.mxu2 }
 0x153   : > { %v1081_v10 = vpop.f32.mrf.mxu3  ;;  %v993_v8 = vadd.f32 %v925_v21, %v663_v55  ;;  %v665_v61 = vpop.f32.mrf.mxu1 }
 0x154   : > { %v666_v43 = vadd.f32 %v665_v61, %v3372_v13 }
 0x155   : > { %v1149_v30 = vadd.f32 %v1081_v10, %v993_v8 }
 0x156   : > { %2212 = vmatmul.msk.f32.gmra.mxu1 %vm361_vm1, %v4282_v42  ;;  %v1244_v46 = vpop.f32.mrf.mxu0 }
 0x157   : > { %v3658_v22 = vadd.f32 %v1241_v0, %v1149_v30  ;;  %2248 = vmatmul.msk.f32.gmra.mxu2 %vm361_vm1, %v3651_v19 }
 0x158   : > { %2284 = vmatmul.msk.f32.gmra.mxu3 %vm361_vm1, %v3616_v4 }
 0x159   : > { %2320 = vmatmul.msk.f32.gmra.mxu0 %vm361_vm1, %v3656_v38 }
 0x15a   : > { %v928_v12 = vpop.f32.mrf.mxu2 }
 0x15b   : > { %v1084_v62 = vpop.f32.mrf.mxu3  ;;  %v994_v42 = vadd.f32 %v928_v12, %v666_v43  ;;  %v668_v55 = vpop.f32.mrf.mxu1 }
 0x15c   : > { %v669_v13 = vadd.f32 %v668_v55, %v3233_v32 }
 0x15d   : > { %v1150_v21 = vadd.f32 %v1084_v62, %v994_v42 }
 0x15e   : > { %2325 = vmatmul.msk.f32.vlgmr.msra.gmra.mxu1 %vm361_vm1, %v3131_v34  ;;  %v1247_v30 = vpop.f32.mrf.mxu0 }
 0x15f   : > { %v3669_v57 = vadd.f32 %v1244_v46, %v1150_v21  ;;  %2361 = vmatmul.msk.f32.vlgmr.msra.gmra.mxu2 %vm361_vm1, %v2937_v51 }
 0x160   : > { %2397 = vmatmul.msk.f32.vlgmr.msra.gmra.mxu3 %vm361_vm1, %v2974_v18 }
 0x161   : > { %2433 = vmatmul.msk.f32.vlgmr.msra.gmra.mxu0 %vm361_vm1, %v3156_v7 }
 0x162   : > { %v931_v0 = vpop.f32.mrf.mxu2 }
 0x163   : > { %v1087_v10 = vpop.f32.mrf.mxu3  ;;  %v995_v44 = vadd.f32 %v931_v0, %v669_v13  ;;  %v671_v8 = vpop.f32.mrf.mxu1 }
 0x164   : > { %v672_v51 = vadd.f32 %v671_v8, %v3254_v23 }
 0x165   : > { %v1151_v61 = vadd.f32 %v1087_v10, %v995_v44 }
 0x166   : > { %2326 = vmatmul.msk.f32.gmra.mxu1 %vm361_vm1, %v3143_v6  ;;  %v1250_v34 = vpop.f32.mrf.mxu0 }
 0x167   : > { %v3680_v46 = vadd.f32 %v1247_v30, %v1151_v61  ;;  %2362 = vmatmul.msk.f32.gmra.mxu2 %vm361_vm1, %v2940_v52 }
 0x168   : > { %2398 = vmatmul.msk.f32.gmra.mxu3 %vm361_vm1, %v3028_v50 }
 0x169   : > { %2434 = vmatmul.msk.f32.gmra.mxu0 %vm361_vm1, %v3177_v60 }
 0x16a   : > { %v934_v18 = vpop.f32.mrf.mxu2 }
 0x16b   : > { %v1090_v32 = vpop.f32.mrf.mxu3  ;;  %v996_v43 = vadd.f32 %v934_v18, %v672_v51  ;;  %v674_v12 = vpop.f32.mrf.mxu1 }
 0x16c   : > { %v675_v52 = vadd.f32 %v674_v12, %v3274_v26  ;;  %v2527_v12 = vld [vmem:[%s2707_s19 + $0x68] sm:$0xff] }
 0x16d   : > { %v1152_v62 = vadd.f32 %v1090_v32, %v996_v43 }
 0x16e   : > { %2327 = vmatmul.msk.f32.gmra.mxu1 %vm361_vm1, %v3156_v7  ;;  %v1253_v6 = vpop.f32.mrf.mxu0 }
 0x16f   : > { %v3691_v42 = vadd.f32 %v1250_v34, %v1152_v62  ;;  %2363 = vmatmul.msk.f32.gmra.mxu2 %vm361_vm1, %v3037_v20 }
 0x170   : > { %2399 = vmatmul.msk.f32.gmra.mxu3 %vm361_vm1, %v3074_v16 }
 0x171   : > { %2435 = vmatmul.msk.f32.gmra.mxu0 %vm361_vm1, %v3193_v54 }
 0x172   : > { %v937_v50 = vpop.f32.mrf.mxu2 }
 0x173   : > { %v1093_v23 = vpop.f32.mrf.mxu3  ;;  %v997_v55 = vadd.f32 %v937_v50, %v675_v52  ;;  %v677_v21 = vpop.f32.mrf.mxu1 }
 0x174   : > { %v678_v16 = vadd.f32 %v677_v21, %v3295_v59  ;;  %v4285_v59 = vld [vmem:[#allocation37_spill] sm:$0xff] }
 0x175   : > { %v1153_v30 = vadd.f32 %v1093_v23, %v997_v55 }
 0x176   : > { %2328 = vmatmul.msk.f32.gmra.mxu1 %vm361_vm1, %v3177_v60  ;;  %v1256_v7 = vpop.f32.mrf.mxu0 }
 0x177   : > { %v3702_v13 = vadd.f32 %v1253_v6, %v1153_v30  ;;  %2364 = vmatmul.msk.f32.gmra.mxu2 %vm361_vm1, %v3040_v58  ;;  %v2526_v58 = vld [vmem:[%s2707_s19 + $0x60] sm:$0xff]  ;;  %v4288_v6 = vld [vmem:[#allocation39_spill] sm:$0xff] }
 0x178   : > { %2400 = vmatmul.msk.f32.gmra.mxu3 %vm361_vm1, %v3101_v49 }
 0x179   : > { %2436 = vmatmul.msk.f32.gmra.mxu0 %vm361_vm1, %v3205_v37 }
 0x17a   : > { %v940_v20 = vpop.f32.mrf.mxu2 }
 0x17b   : > { %v1096_v26 = vpop.f32.mrf.mxu3  ;;  %v998_v0 = vadd.f32 %v940_v20, %v678_v16  ;;  %v680_v10 = vpop.f32.mrf.mxu1  ;;  %v4289_v16 = vld [vmem:[#allocation15_spill] sm:$0xff] }
 0x17c   : > { %v681_v49 = vadd.f32 %v680_v10, %v3321_v31  ;;  %v4287_v31 = vld [vmem:[#allocation48_spill] sm:$0xff]  ;;  %v4290_v20 = vld [vmem:[#allocation51_spill] sm:$0xff] }
 0x17d   : > { %v1154_v44 = vadd.f32 %v1096_v26, %v998_v0  ;;  %v4291_v0 = vld [vmem:[#allocation41_spill] sm:$0xff] }
 0x17e   : > { %2329 = vmatmul.msk.f32.gmra.mxu1 %vm361_vm1, %v3193_v54  ;;  %v1259_v60 = vpop.f32.mrf.mxu0 }
 0x17f   : > { %v3713_v8 = vadd.f32 %v1256_v7, %v1154_v44  ;;  %2365 = vmatmul.msk.f32.gmra.mxu2 %vm361_vm1, %v2526_v58  ;;  %v2528_v7 = vld [vmem:[%s2707_s19 + $0x78] sm:$0xff] }
 0x180   : > { %2401 = vmatmul.msk.f32.gmra.mxu3 %vm361_vm1, %v2752_v24  ;;  %v4286_v24 = vld [vmem:[#allocation10_spill] sm:$0xff] }
 0x181   : > { %2437 = vmatmul.msk.f32.gmra.mxu0 %vm361_vm1, %v4285_v59 }
 0x182   : > { %v943_v61 = vpop.f32.mrf.mxu2 }
 0x183   : > { %v1099_v34 = vpop.f32.mrf.mxu3  ;;  %v999_v51 = vadd.f32 %v943_v61, %v681_v49  ;;  %v683_v18 = vpop.f32.mrf.mxu1 }
 0x184   : > { %v684_v62 = vadd.f32 %v683_v18, %v4287_v31  ;;  %v4293_v18 = vld [vmem:[#allocation54_spill] sm:$0xff] }
 0x185   : > { %v1155_v54 = vadd.f32 %v1099_v34, %v999_v51  ;;  %v2529_v34 = vld [vmem:[%s2707_s19 + $0x80] sm:$0xff]  ;;  %v4292_v51 = vld [vmem:[#allocation18_spill] sm:$0xff] }
 0x186   : > { %2330 = vmatmul.msk.f32.gmra.mxu1 %vm361_vm1, %v3205_v37  ;;  %v1262_v32 = vpop.f32.mrf.mxu0 }
 0x187   : > { %v3724_v43 = vadd.f32 %v1259_v60, %v1155_v54  ;;  %2366 = vmatmul.msk.f32.gmra.mxu2 %vm361_vm1, %v2527_v12 }
 0x188   : > { %2402 = vmatmul.msk.f32.gmra.mxu3 %vm361_vm1, %v4286_v24 }
 0x189   : > { %2438 = vmatmul.msk.f32.gmra.mxu0 %vm361_vm1, %v4288_v6 }
 0x18a   : > { %v946_v52 = vpop.f32.mrf.mxu2 }
 0x18b   : > { %v1102_v50 = vpop.f32.mrf.mxu3  ;;  %v1000_v23 = vadd.f32 %v946_v52, %v684_v62  ;;  %v686_v55 = vpop.f32.mrf.mxu1 }
 0x18c   : > { %v687_v26 = vadd.f32 %v686_v55, %v4290_v20  ;;  %v4295_v55 = vld [vmem:[#allocation22_spill] sm:$0xff] }
 0x18d   : > { %v1156_v37 = vadd.f32 %v1102_v50, %v1000_v23  ;;  %v2530_v23 = vld [vmem:[%s2707_s19 + $0x90] sm:$0xff] }
 0x18e   : > { %2331 = vmatmul.msk.f32.gmra.mxu1 %vm361_vm1, %v4285_v59  ;;  %v1265_v21 = vpop.f32.mrf.mxu0 }
 0x18f   : > { %v3735_v30 = vadd.f32 %v1262_v32, %v1156_v37  ;;  %2367 = vmatmul.msk.f32.gmra.mxu2 %vm361_vm1, %v2528_v7  ;;  %v4294_v32 = vld [vmem:[#allocation43_spill] sm:$0xff]  ;;  %v4296_v37 = vld [vmem:[#allocation38_spill] sm:$0xff]  ;;  %v4297_v7 = vld [vmem:[#allocation45_spill] sm:$0xff] }
 0x190   : > { %2403 = vmatmul.msk.f32.gmra.mxu3 %vm361_vm1, %v4289_v16 }
 0x191   : > { %2439 = vmatmul.msk.f32.gmra.mxu0 %vm361_vm1, %v4291_v0 }
 0x192   : > { %v949_v10 = vpop.f32.mrf.mxu2 }
 0x193   : > { %v1105_v44 = vpop.f32.mrf.mxu3  ;;  %v1001_v60 = vadd.f32 %v949_v10, %v687_v26  ;;  %v689_v58 = vpop.f32.mrf.mxu1 }
 0x194   : > { %v690_v54 = vadd.f32 %v689_v58, %v4293_v18  ;;  %v2531_v58 = vld [vmem:[%s2707_s19 + $0x98] sm:$0xff] }
 0x195   : > { %v1157_v49 = vadd.f32 %v1105_v44, %v1001_v60 }
 0x196   : > { %2332 = vmatmul.msk.f32.gmra.mxu1 %vm361_vm1, %v4288_v6  ;;  %v1268_v59 = vpop.f32.mrf.mxu0 }
 0x197   : > { %v3746_v61 = vadd.f32 %v1265_v21, %v1157_v49  ;;  %2368 = vmatmul.msk.f32.gmra.mxu2 %vm361_vm1, %v2529_v34  ;;  %v4298_v49 = vld [vmem:[#allocation26_spill] sm:$0xff] }
 0x198   : > { %2404 = vmatmul.msk.f32.gmra.mxu3 %vm361_vm1, %v4292_v51  ;;  %v4300_v51 = vld [vmem:[#allocation47_spill] sm:$0xff] }
 0x199   : > { %2440 = vmatmul.msk.f32.gmra.mxu0 %vm361_vm1, %v4294_v32 }
 0x19a   : > { %v952_v12 = vpop.f32.mrf.mxu2 }
 0x19b   : > { %v1108_v24 = vpop.f32.mrf.mxu3  ;;  %v1002_v31 = vadd.f32 %v952_v12, %v690_v54  ;;  %v692_v62 = vpop.f32.mrf.mxu1 }
 0x19c   : > { %v693_v21 = vadd.f32 %v692_v62, %v4296_v37  ;;  %v4303_v37 = vld [vmem:[#allocation50_spill] sm:$0xff] }
 0x19d   : > { %v1158_v6 = vadd.f32 %v1108_v24, %v1002_v31 }
 0x19e   : > { %2333 = vmatmul.msk.f32.gmra.mxu1 %vm361_vm1, %v4291_v0  ;;  %v1271_v52 = vpop.f32.mrf.mxu0 }
 0x19f   : > { %v3757_v50 = vadd.f32 %v1268_v59, %v1158_v6  ;;  %2369 = vmatmul.msk.f32.gmra.mxu2 %vm361_vm1, %v2530_v23  ;;  %v4299_v59 = vld [vmem:[#allocation40_spill] sm:$0xff]  ;;  %v2532_v6 = vld [vmem:[%s2707_s19 + $0xa8] sm:$0xff] }
 0x1a0   : > { %2405 = vmatmul.msk.f32.gmra.mxu3 %vm361_vm1, %v4295_v55  ;;  %v4302_v23 = vld [vmem:[#allocation42_spill] sm:$0xff] }
 0x1a1   : > { %2441 = vmatmul.msk.f32.gmra.mxu0 %vm361_vm1, %v4297_v7 }
 0x1a2   : > { %v955_v16 = vpop.f32.mrf.mxu2 }
 0x1a3   : > { %v1111_v20 = vpop.f32.mrf.mxu3  ;;  %v1003_v26 = vadd.f32 %v955_v16, %v693_v21  ;;  %v695_v10 = vpop.f32.mrf.mxu1 }
 0x1a4   : > { %v696_v34 = vadd.f32 %v695_v10, %v4299_v59 }
 0x1a5   : > { %v1159_v0 = vadd.f32 %v1111_v20, %v1003_v26 }
 0x1a6   : > { %2334 = vmatmul.msk.f32.gmra.mxu1 %vm361_vm1, %v4294_v32  ;;  %v1274_v44 = vpop.f32.mrf.mxu0 }
 0x1a7   : > { %v3768_v60 = vadd.f32 %v1271_v52, %v1159_v0  ;;  %2370 = vmatmul.msk.f32.gmra.mxu2 %vm361_vm1, %v2531_v58  ;;  %v4301_v52 = vld [vmem:[#allocation31_spill] sm:$0xff] }
 0x1a8   : > { %2406 = vmatmul.msk.f32.gmra.mxu3 %vm361_vm1, %v4298_v49  ;;  %v4304_v58 = vld [vmem:[#allocation35_spill] sm:$0xff]  ;;  %v4305_v49 = vld [vmem:[#allocation44_spill] sm:$0xff] }
 0x1a9   : > { %2442 = vmatmul.msk.f32.gmra.mxu0 %vm361_vm1, %v4300_v51 }
 0x1aa   : > { %v958_v18 = vpop.f32.mrf.mxu2 }
 0x1ab   : > { %v1114_v54 = vpop.f32.mrf.mxu3  ;;  %v1004_v12 = vadd.f32 %v958_v18, %v696_v34  ;;  %v698_v24 = vpop.f32.mrf.mxu1  ;;  %v4306_v34 = vld [vmem:[#allocation53_spill] sm:$0xff] }
 0x1ac   : > { %v699_v55 = vadd.f32 %v698_v24, %v4302_v23  ;;  %v4308_v23 = vld [vmem:[#allocation46_spill] sm:$0xff] }
 0x1ad   : > { %v1160_v32 = vadd.f32 %v1114_v54, %v1004_v12 }
 0x1ae   : > { %2335 = vmatmul.msk.f32.gmra.mxu1 %vm361_vm1, %v4297_v7  ;;  %v1277_v31 = vpop.f32.mrf.mxu0 }
 0x1af   : > { %v3779_v62 = vadd.f32 %v1274_v44, %v1160_v32  ;;  %2371 = vmatmul.msk.f32.gmra.mxu2 %vm361_vm1, %v2532_v6  ;;  %v2533_v44 = vld [vmem:[%s2707_s19 + $0xb0] sm:$0xff]  ;;  %v2534_v6 = vld [vmem:[%s2707_s19 + $0xc0] sm:$0xff] }
 0x1b0   : > { %2407 = vmatmul.msk.f32.gmra.mxu3 %vm361_vm1, %v4301_v52  ;;  %v4307_v52 = vld [vmem:[#allocation7_spill] sm:$0xff] }
 0x1b1   : > { %2443 = vmatmul.msk.f32.gmra.mxu0 %vm361_vm1, %v4303_v37 }
 0x1b2   : > { %v961_v21 = vpop.f32.mrf.mxu2 }
 0x1b3   : > { %v1117_v16 = vpop.f32.mrf.mxu3  ;;  %v1005_v20 = vadd.f32 %v961_v21, %v699_v55  ;;  %v701_v26 = vpop.f32.mrf.mxu1  ;;  %v4309_v21 = vld [vmem:[#allocation56_spill] sm:$0xff] }
 0x1b4   : > { %v702_v59 = vadd.f32 %v701_v26, %v4305_v49  ;;  %v4310_v49 = vld [vmem:[#allocation11_spill] sm:$0xff] }
 0x1b5   : > { %v1161_v7 = vadd.f32 %v1117_v16, %v1005_v20 }
 0x1b6   : > { %2336 = vmatmul.msk.f32.gmra.mxu1 %vm361_vm1, %v4300_v51  ;;  %v1280_v10 = vpop.f32.mrf.mxu0 }
 0x1b7   : > { %v3790_v0 = vadd.f32 %v1277_v31, %v1161_v7  ;;  %2372 = vmatmul.msk.f32.gmra.mxu2 %vm361_vm1, %v2533_v44 }
 0x1b8   : > { %2408 = vmatmul.msk.f32.gmra.mxu3 %vm361_vm1, %v4304_v58  ;;  %v2535_v58 = vld [vmem:[%s2707_s19 + $0xc8] sm:$0xff] }
 0x1b9   : > { %2444 = vmatmul.msk.f32.gmra.mxu0 %vm361_vm1, %v4306_v34 }
 0x1ba   : > { %v964_v18 = vpop.f32.mrf.mxu2 }
 0x1bb   : > { %v1120_v54 = vpop.f32.mrf.mxu3  ;;  %v1006_v12 = vadd.f32 %v964_v18, %v702_v59  ;;  %v704_v24 = vpop.f32.mrf.mxu1  ;;  %v4311_v59 = vld [vmem:[#allocation49_spill] sm:$0xff] }
 0x1bc   : > { %v705_v55 = vadd.f32 %v704_v24, %v4308_v23  ;;  %v4312_v23 = vld [vmem:[#allocation52_spill] sm:$0xff] }
 0x1bd   : > { %v1162_v51 = vadd.f32 %v1120_v54, %v1006_v12 }
 0x1be   : > { %2337 = vmatmul.msk.f32.gmra.mxu1 %vm361_vm1, %v4303_v37  ;;  %v1283_v32 = vpop.f32.mrf.mxu0 }
 0x1bf   : > { %v3801_v31 = vadd.f32 %v1280_v10, %v1162_v51  ;;  %2373 = vmatmul.msk.f32.gmra.mxu2 %vm361_vm1, %v2534_v6 }
 0x1c0   : > { %2409 = vmatmul.msk.f32.gmra.mxu3 %vm361_vm1, %v4307_v52  ;;  %v2536_v52 = vld [vmem:[%s2707_s19 + $0xd8] sm:$0xff] }
 0x1c1   : > { %2445 = vmatmul.msk.f32.gmra.mxu0 %vm361_vm1, %v4309_v21 }
 0x1c2   : > { %v967_v16 = vpop.f32.mrf.mxu2 }
 0x1c3   : > { %v1123_v20 = vpop.f32.mrf.mxu3  ;;  %v1007_v26 = vadd.f32 %v967_v16, %v705_v55  ;;  %v707_v7 = vpop.f32.mrf.mxu1 }
 0x1c4   : > { %v708_v18 = vadd.f32 %v707_v7, %v4311_v59 }
 0x1c5   : > { %v1163_v37 = vadd.f32 %v1123_v20, %v1007_v26 }
 0x1c6   : > { %2338 = vmatmul.msk.f32.gmra.mxu1 %vm361_vm1, %v4306_v34  ;;  %v1286_v10 = vpop.f32.mrf.mxu0 }
 0x1c7   : > { %v3812_v44 = vadd.f32 %v1283_v32, %v1163_v37  ;;  %2374 = vmatmul.msk.f32.gmra.mxu2 %vm361_vm1, %v2535_v58  ;;  %v2537_v58 = vld [vmem:[%s2707_s19 + $0xe0] sm:$0xff] }
 0x1c8   : > { %2410 = vmatmul.msk.f32.gmra.mxu3 %vm361_vm1, %v4310_v49 }
 0x1c9   : > { %2446 = vmatmul.msk.f32.gmra.mxu0 %vm361_vm1, %v3407_v11 }
 0x1ca   : > { %v970_v54 = vpop.f32.mrf.mxu2 }
 0x1cb   : > { %v1126_v12 = vpop.f32.mrf.mxu3  ;;  %v1008_v24 = vadd.f32 %v970_v54, %v708_v18  ;;  %v710_v51 = vpop.f32.mrf.mxu1 }
 0x1cc   : > { %v711_v55 = vadd.f32 %v710_v51, %v4312_v23 }
 0x1cd   : > { %v1164_v34 = vadd.f32 %v1126_v12, %v1008_v24 }
 0x1ce   : > { %2339 = vmatmul.msk.f32.gmra.mxu1 %vm361_vm1, %v4309_v21  ;;  %v1289_v32 = vpop.f32.mrf.mxu0 }
 0x1cf   : > { %v3823_v6 = vadd.f32 %v1286_v10, %v1164_v34  ;;  %2375 = vmatmul.msk.f32.gmra.mxu2 %vm361_vm1, %v2536_v52  ;;  %v2538_v34 = vld [vmem:[%s2707_s19 + $0xf0] sm:$0xff] }
 0x1d0   : > { %2411 = vmatmul.msk.f32.gmra.mxu3 %vm361_vm1, %v2857_v1  ;;  %v4313_v1 = vld [vmem:[#allocation55_spill] sm:$0xff] }
 0x1d1   : > { %2447 = vmatmul.msk.f32.gmra.mxu0 %vm361_vm1, %v3423_v15 }
 0x1d2   : > { %v973_v16 = vpop.f32.mrf.mxu2 }
 0x1d3   : > { %v1129_v20 = vpop.f32.mrf.mxu3  ;;  %v1009_v26 = vadd.f32 %v973_v16, %v711_v55  ;;  %v713_v7 = vpop.f32.mrf.mxu1  ;;  %v3858_v16 = vld [vmem:[%s4117_s2] ss:$0 sm:$0xff] }
 0x1d4   : > { %v714_v49 = vadd.f32 %v713_v7, %v4313_v1 }
 0x1d5   : > { %v1165_v21 = vadd.f32 %v1129_v20, %v1009_v26  ;;  %v2539_v20 = vld [vmem:[%s2707_s19 + $0xf8] sm:$0xff] }
 0x1d6   : > { %2340 = vmatmul.msk.f32.gmra.mxu1 %vm361_vm1, %v3407_v11  ;;  %v1292_v37 = vpop.f32.mrf.mxu0 }
 0x1d7   : > { %v3834_v10 = vadd.f32 %v1289_v32, %v1165_v21  ;;  %2376 = vmatmul.msk.f32.gmra.mxu2 %vm361_vm1, %v2537_v58 }
 0x1d8   : > { %2412 = vmatmul.msk.f32.gmra.mxu3 %vm361_vm1, %v2902_v27 }
 0x1d9   : > { %2448 = vmatmul.msk.f32.gmra.mxu0 %vm361_vm1, %v3438_v29 }
 0x1da   : > { %v976_v59 = vpop.f32.mrf.mxu2 }
 0x1db   : > { %v1132_v18 = vpop.f32.mrf.mxu3  ;;  %v1010_v54 = vadd.f32 %v976_v59, %v714_v49  ;;  %v1358_v11 = vpop.f32.mrf.mxu1  ;;  %v2540_v59 = vld [vmem:[%s2707_s19 + $0x108] sm:$0xff] }
 0x1dc   : > { %v1454_v27 = vadd.f32 %v1358_v11, %v3411_v39 }
 0x1dd   : > { %v1166_v12 = vadd.f32 %v1132_v18, %v1010_v54 }
 0x1de   : > { %2341 = vmatmul.msk.f32.gmra.mxu1 %vm361_vm1, %v3423_v15  ;;  %v1833_v24 = vpop.f32.mrf.mxu0 }
 0x1df   : > { %v3845_v51 = vadd.f32 %v1292_v37, %v1166_v12  ;;  %2377 = vmatmul.msk.f32.gmra.mxu2 %vm361_vm1, %v2538_v34 }
 0x1e0   : > { %2413 = vmatmul.msk.f32.gmra.mxu3 %vm361_vm1, %v2957_v63 }
 0x1e1   : > { %2449 = vmatmul.msk.f32.gmra.mxu0 %vm361_vm1, %v3454_v2 }
 0x1e2   : > { %v1514_v32 = vpop.f32.mrf.mxu2 }
 0x1e3   : > { %v1674_v52 = vpop.f32.mrf.mxu3  ;;  %v1610_v23 = vadd.f32 %v1514_v32, %v1454_v27  ;;  %v1361_v15 = vpop.f32.mrf.mxu1 }
 0x1e4   : > { %v1455_v26 = vadd.f32 %v1361_v15, %v3427_v48 }
 0x1e5   : > { %v1770_v55 = vadd.f32 %v1674_v52, %v1610_v23  ;;  %v2541_v52 = vld [vmem:[%s2707_s19 + $0x110] sm:$0xff] }
 0x1e6   : > { %2342 = vmatmul.msk.f32.gmra.mxu1 %vm361_vm1, %v3438_v29  ;;  %v1836_v63 = vpop.f32.mrf.mxu0 }
 0x1e7   : > { %v1929_v39 = vadd.f32 %v1833_v24, %v1770_v55  ;;  %2378 = vmatmul.msk.f32.gmra.mxu2 %vm361_vm1, %v2539_v20 }
 0x1e8   : > { %2414 = vmatmul.msk.f32.gmra.mxu3 %vm361_vm1, %v3002_v5 }
 0x1e9   : > { %v1965_v7 = vadd.f32 %v3858_v16, %v1929_v39  ;;  %2450 = vmatmul.msk.f32.gmra.mxu0 %vm361_vm1, %v3478_v9 }
 0x1ea   : > { %v1517_v21 = vpop.f32.mrf.mxu2 }
 0x1eb   : > { %v1677_v29 = vpop.f32.mrf.mxu3  ;;  %v1997_v37 = vmax.f32 %v1965_v7, 0.0  ;;  %v1611_v58 = vadd.f32 %v1517_v21, %v1455_v26  ;;  %v1364_v1 = vpop.f32.mrf.mxu1  ;;  %v2542_v21 = vld [vmem:[%s2707_s19 + $0x120] sm:$0xff] }
 0x1ec   : > { %v1456_v18 = vadd.f32 %v1364_v1, %v3442_v3  ;;  %v4314_v3 = vld [vmem:[#allocation57_spill] sm:$0xff] }
 0x1ed   : > { %2029 = vst [vmem:[%s3872_s9] sm:$0xff] %v1997_v37  ;;  %v1771_v49 = vadd.f32 %v1677_v29, %v1611_v58  ;;  %v4315_v29 = vld [vmem:[#allocation24_spill] sm:$0xff]  ;;  %v4316_v1 = vld [vmem:[#allocation5_spill] sm:$0xff] }
 0x1ee   : > { %2343 = vmatmul.msk.f32.gmra.mxu1 %vm361_vm1, %v3454_v2  ;;  %v1839_v5 = vpop.f32.mrf.mxu0 }
 0x1ef   : > { %v1930_v48 = vadd.f32 %v1836_v63, %v1771_v49  ;;  %2379 = vmatmul.msk.f32.gmra.mxu2 %vm361_vm1, %v2540_v59 }
 0x1f0   : > { %2415 = vmatmul.msk.f32.gmra.mxu3 %vm361_vm1, %v4250_v14 }
 0x1f1   : > { %v1966_v54 = vadd.f32 %v3858_v16, %v1930_v48  ;;  %2451 = vmatmul.msk.f32.gmra.mxu0 %vm361_vm1, %v3497_v33 }
 0x1f2   : > { %v1520_v11 = vpop.f32.mrf.mxu2 }
 0x1f3   : > { %v1680_v12 = vpop.f32.mrf.mxu3  ;;  %v1998_v24 = vmax.f32 %v1966_v54, 0.0  ;;  %v1612_v2 = vadd.f32 %v1520_v11, %v1456_v18  ;;  %v1367_v34 = vpop.f32.mrf.mxu1  ;;  %v2543_v11 = vld [vmem:[%s2707_s19 + $0x128] sm:$0xff] }
 0x1f4   : > { %v1457_v23 = vadd.f32 %v1367_v34, %v4314_v3 }
 0x1f5   : > { %2030 = vst [vmem:[%s3872_s9 + $0x8] sm:$0xff] %v1998_v24  ;;  %v1772_v27 = vadd.f32 %v1680_v12, %v1612_v2  ;;  %v4317_v12 = vld [vmem:[#allocation12_spill] sm:$0xff] }
 0x1f6   : > { %2344 = vmatmul.msk.f32.gmra.mxu1 %vm361_vm1, %v3478_v9  ;;  %v1842_v32 = vpop.f32.mrf.mxu0  ;;  %v4318_v24 = vld [vmem:[#allocation32_spill] sm:$0xff] }
 0x1f7   : > { %v1931_v14 = vadd.f32 %v1839_v5, %v1772_v27  ;;  %2380 = vmatmul.msk.f32.gmra.mxu2 %vm361_vm1, %v2541_v52 }
 0x1f8   : > { %2416 = vmatmul.msk.f32.gmra.mxu3 %vm361_vm1, %v3093_v17 }
 0x1f9   : > { %v1967_v15 = vadd.f32 %v3858_v16, %v1931_v14  ;;  %2452 = vmatmul.msk.f32.gmra.mxu0 %vm361_vm1, %v3512_v41 }
 0x1fa   : > { %v1523_v55 = vpop.f32.mrf.mxu2 }
 0x1fb   : > { %v1683_v63 = vpop.f32.mrf.mxu3  ;;  %v1999_v39 = vmax.f32 %v1967_v15, 0.0  ;;  %v1613_v9 = vadd.f32 %v1523_v55, %v1457_v23  ;;  %v1370_v20 = vpop.f32.mrf.mxu1  ;;  %v2544_v55 = vld [vmem:[%s2707_s19 + $0x138] sm:$0xff] }
 0x1fc   : > { %v1458_v37 = vadd.f32 %v1370_v20, %v4315_v29  ;;  %v4320_v20 = vld [vmem:[#allocation6_spill] sm:$0xff] }
 0x1fd   : > { %2031 = vst [vmem:[%s3872_s9 + $0x10] sm:$0xff] %v1999_v39  ;;  %v1773_v26 = vadd.f32 %v1683_v63, %v1613_v9  ;;  %v4319_v63 = vld [vmem:[#allocation28_spill] sm:$0xff] }
 0x1fe   : > { %2345 = vmatmul.msk.f32.gmra.mxu1 %vm361_vm1, %v3497_v33  ;;  %v1845_v7 = vpop.f32.mrf.mxu0 }
 0x1ff   : > { %v1932_v17 = vadd.f32 %v1842_v32, %v1773_v26  ;;  %2381 = vmatmul.msk.f32.gmra.mxu2 %vm361_vm1, %v2542_v21 }
 0x200   : > { %2417 = vmatmul.msk.f32.gmra.mxu3 %vm361_vm1, %v4256_v28 }
 0x201   : > { %v1968_v58 = vadd.f32 %v3858_v16, %v1932_v17  ;;  %2453 = vmatmul.msk.f32.gmra.mxu0 %vm361_vm1, %v4316_v1 }
 0x202   : > { %v1526_v49 = vpop.f32.mrf.mxu2 }
 0x203   : > { %v1686_v5 = vpop.f32.mrf.mxu3  ;;  %v2000_v48 = vmax.f32 %v1968_v58, 0.0  ;;  %v1614_v33 = vadd.f32 %v1526_v49, %v1458_v37  ;;  %v1373_v59 = vpop.f32.mrf.mxu1  ;;  %v4321_v49 = vld [vmem:[#allocation19_spill] sm:$0xff] }
 0x204   : > { %v1459_v2 = vadd.f32 %v1373_v59, %v4318_v24 }
 0x205   : > { %2032 = vst [vmem:[%s3872_s9 + $0x18] sm:$0xff] %v2000_v48  ;;  %v1774_v18 = vadd.f32 %v1686_v5, %v1614_v33  ;;  %v4322_v5 = vld [vmem:[#allocation34_spill] sm:$0xff] }
 0x206   : > { %2346 = vmatmul.msk.f32.gmra.mxu1 %vm361_vm1, %v3512_v41  ;;  %v1848_v54 = vpop.f32.mrf.mxu0 }
 0x207   : > { %v1933_v28 = vadd.f32 %v1845_v7, %v1774_v18  ;;  %2382 = vmatmul.msk.f32.gmra.mxu2 %vm361_vm1, %v2543_v11 }
 0x208   : > { %2418 = vmatmul.msk.f32.gmra.mxu3 %vm361_vm1, %v4317_v12 }
 0x209   : > { %v1969_v34 = vadd.f32 %v3858_v16, %v1933_v28  ;;  %2454 = vmatmul.msk.f32.gmra.mxu0 %vm361_vm1, %v3543_v47 }
 0x20a   : > { %v1529_v27 = vpop.f32.mrf.mxu2 }
 0x20b   : > { %v1689_v32 = vpop.f32.mrf.mxu3  ;;  %v2001_v14 = vmax.f32 %v1969_v34, 0.0  ;;  %v1615_v41 = vadd.f32 %v1529_v27, %v1459_v2  ;;  %v1376_v52 = vpop.f32.mrf.mxu1  ;;  %v2546_v2 = vld [vmem:[%s2707_s19 + $0x150] sm:$0xff]  ;;  %v4323_v34 = vld [vmem:[#allocation8_spill] sm:$0xff] }
 0x20c   : > { %v1460_v39 = vadd.f32 %v1376_v52, %v4319_v63 }
 0x20d   : > { %2033 = vst [vmem:[%s3872_s9 + $0x20] sm:$0xff] %v2001_v14  ;;  %v1775_v3 = vadd.f32 %v1689_v32, %v1615_v41  ;;  %v4324_v14 = vld [vmem:[#allocation16_spill] sm:$0xff] }
 0x20e   : > { %2347 = vmatmul.msk.f32.gmra.mxu1 %vm361_vm1, %v4316_v1  ;;  %v1851_v23 = vpop.f32.mrf.mxu0  ;;  %v2545_v1 = vld [vmem:[%s2707_s19 + $0x140] sm:$0xff] }
 0x20f   : > { %v1934_v15 = vadd.f32 %v1848_v54, %v1775_v3  ;;  %2383 = vmatmul.msk.f32.gmra.mxu2 %vm361_vm1, %v2544_v55 }
 0x210   : > { %2419 = vmatmul.msk.f32.gmra.mxu3 %vm361_vm1, %v4264_v36 }
 0x211   : > { %v1970_v9 = vadd.f32 %v3858_v16, %v1934_v15  ;;  %2455 = vmatmul.msk.f32.gmra.mxu0 %vm361_vm1, %v4320_v20 }
 0x212   : > { %v1532_v26 = vpop.f32.mrf.mxu2 }
 0x213   : > { %v1692_v7 = vpop.f32.mrf.mxu3  ;;  %v2002_v17 = vmax.f32 %v1970_v9, 0.0  ;;  %v1616_v21 = vadd.f32 %v1532_v26, %v1460_v39  ;;  %v1379_v29 = vpop.f32.mrf.mxu1  ;;  %v2547_v39 = vld [vmem:[%s2707_s19 + $0x158] sm:$0xff]  ;;  %v4325_v9 = vld [vmem:[#allocation27_spill] sm:$0xff] }
 0x214   : > { %v1461_v48 = vadd.f32 %v1379_v29, %v4322_v5  ;;  %v4327_v5 = vld [vmem:[#allocation33_spill] sm:$0xff] }
 0x215   : > { %2034 = vst [vmem:[%s3872_s9 + $0x28] sm:$0xff] %v2002_v17  ;;  %v1776_v37 = vadd.f32 %v1692_v7, %v1616_v21 }
 0x216   : > { %2348 = vmatmul.msk.f32.gmra.mxu1 %vm361_vm1, %v3543_v47  ;;  %v1854_v58 = vpop.f32.mrf.mxu0 }
 0x217   : > { %v1935_v36 = vadd.f32 %v1851_v23, %v1776_v37  ;;  %2384 = vmatmul.msk.f32.gmra.mxu2 %vm361_vm1, %v2545_v1 }
 0x218   : > { %2420 = vmatmul.msk.f32.gmra.mxu3 %vm361_vm1, %v4321_v49  ;;  %v2548_v49 = vld [vmem:[%s2707_s19 + $0x168] sm:$0xff] }
 0x219   : > { %v1971_v33 = vadd.f32 %v3858_v16, %v1935_v36  ;;  %2456 = vmatmul.msk.f32.gmra.mxu0 %vm361_vm1, %v3574_v25 }
 0x21a   : > { %v1535_v59 = vpop.f32.mrf.mxu2 }
 0x21b   : > { %v1695_v18 = vpop.f32.mrf.mxu3  ;;  %v2003_v54 = vmax.f32 %v1971_v33, 0.0  ;;  %v1617_v47 = vadd.f32 %v1535_v59, %v1461_v48  ;;  %v1382_v28 = vpop.f32.mrf.mxu1  ;;  %v4328_v48 = vld [vmem:[#allocation9_spill] sm:$0xff] }
 0x21c   : > { %v1462_v27 = vadd.f32 %v1382_v28, %v4323_v34  ;;  %v2549_v34 = vld [vmem:[%s2707_s19 + $0x170] sm:$0xff] }
 0x21d   : > { %2035 = vst [vmem:[%s3872_s9 + $0x30] sm:$0xff] %v2003_v54  ;;  %v1777_v11 = vadd.f32 %v1695_v18, %v1617_v47 }
 0x21e   : > { %2349 = vmatmul.msk.f32.gmra.mxu1 %vm361_vm1, %v4320_v20  ;;  %v1857_v12 = vpop.f32.mrf.mxu0  ;;  %v4326_v20 = vld [vmem:[#allocation13_spill] sm:$0xff] }
 0x21f   : > { %v1936_v24 = vadd.f32 %v1854_v58, %v1777_v11  ;;  %2385 = vmatmul.msk.f32.gmra.mxu2 %vm361_vm1, %v2546_v2 }
 0x220   : > { %2421 = vmatmul.msk.f32.gmra.mxu3 %vm361_vm1, %v4272_v56 }
 0x221   : > { %v1972_v32 = vadd.f32 %v3858_v16, %v1936_v24  ;;  %2457 = vmatmul.msk.f32.gmra.mxu0 %vm361_vm1, %v4324_v14 }
 0x222   : > { %v1538_v41 = vpop.f32.mrf.mxu2 }
 0x223   : > { %v1698_v52 = vpop.f32.mrf.mxu3  ;;  %v2004_v3 = vmax.f32 %v1972_v32, 0.0  ;;  %v1618_v23 = vadd.f32 %v1538_v41, %v1462_v27  ;;  %v1385_v15 = vpop.f32.mrf.mxu1  ;;  %v4329_v27 = vld [vmem:[#allocation36_spill] sm:$0xff]  ;;  %v4330_v32 = vld [vmem:[#allocation14_spill] sm:$0xff] }
 0x224   : > { %v1463_v26 = vadd.f32 %v1385_v15, %v4326_v20 }
 0x225   : > { %2036 = vst [vmem:[%s3872_s9 + $0x38] sm:$0xff] %v2004_v3  ;;  %v1778_v55 = vadd.f32 %v1698_v52, %v1618_v23  ;;  %v4331_v52 = vld [vmem:[#allocation17_spill] sm:$0xff] }
 0x226   : > { %2350 = vmatmul.msk.f32.gmra.mxu1 %vm361_vm1, %v3574_v25  ;;  %v1860_v63 = vpop.f32.mrf.mxu0  ;;  %v1327_v3 = vrot.slane %v4331_v52, 2 }
 0x227   : > { %v1937_v56 = vadd.f32 %v1857_v12, %v1778_v55  ;;  %2386 = vmatmul.msk.f32.gmra.mxu2 %vm361_vm1, %v2547_v39 }
 0x228   : > { %2422 = vmatmul.msk.f32.gmra.mxu3 %vm361_vm1, %v4325_v9 }
 0x229   : > { %v1973_v7 = vadd.f32 %v3858_v16, %v1937_v56  ;;  %2458 = vmatmul.msk.f32.gmra.mxu0 %vm361_vm1, %v3605_v40 }
 0x22a   : > { %v1541_v17 = vpop.f32.mrf.mxu2 }
 0x22b   : > { %v1701_v21 = vpop.f32.mrf.mxu3  ;;  %v2005_v29 = vmax.f32 %v1973_v7, 0.0  ;;  %v1619_v25 = vadd.f32 %v1541_v17, %v1463_v26  ;;  %v1388_v37 = vpop.f32.mrf.mxu1  ;;  %v4332_v7 = vld [vmem:[#allocation20_spill] sm:$0xff] }
 0x22c   : > { %v1464_v33 = vadd.f32 %v1388_v37, %v4328_v48 }
 0x22d   : > { %2037 = vst [vmem:[%s3872_s9 + $0x40] sm:$0xff] %v2005_v29  ;;  %v1779_v58 = vadd.f32 %v1701_v21, %v1619_v25  ;;  %v1330_v25 = vrot.slane %v3643_v53, 2 }
 0x22e   : > { %2351 = vmatmul.msk.f32.gmra.mxu1 %vm361_vm1, %v4324_v14  ;;  %v1863_v36 = vpop.f32.mrf.mxu0 }
 0x22f   : > { %v1938_v1 = vadd.f32 %v1860_v63, %v1779_v58  ;;  %2387 = vmatmul.msk.f32.gmra.mxu2 %vm361_vm1, %v2548_v49  ;;  %v220_v49 = vld [vmem:[%s2707_s19 + $0x198] sm:$0xff] }
 0x230   : > { %2423 = vmatmul.msk.f32.gmra.mxu3 %vm361_vm1, %v4327_v5  ;;  %v221_v5 = vld [vmem:[%s2707_s19 + $0x1a0] sm:$0xff]  ;;  %v1643_v53 = vrot.slane %v220_v49, 1 }
 0x231   : > { %v1974_v59 = vadd.f32 %v3858_v16, %v1938_v1  ;;  %2459 = vmatmul.msk.f32.gmra.mxu0 %vm361_vm1, %v3629_v45 }
 0x232   : > { %v1544_v18 = vpop.f32.mrf.mxu2 }
 0x233   : > { %v1704_v54 = vpop.f32.mrf.mxu3  ;;  %v2006_v47 = vmax.f32 %v1974_v59, 0.0  ;;  %v1620_v28 = vadd.f32 %v1544_v18, %v1464_v33  ;;  %v1391_v11 = vpop.f32.mrf.mxu1  ;;  %v1644_v59 = vrot.slane %v221_v5, 1  ;;  %v4333_v18 = vld [vmem:[#allocation23_spill] sm:$0xff] }
 0x234   : > { %v1465_v14 = vadd.f32 %v1391_v11, %v4330_v32  ;;  %v1802_v11 = vrot.slane %v220_v49, 2 }
 0x235   : > { %2038 = vst [vmem:[%s3872_s9 + $0x48] sm:$0xff] %v2006_v47  ;;  %v1780_v12 = vadd.f32 %v1704_v54, %v1620_v28 }
 0x236   : > { %2352 = vmatmul.msk.f32.gmra.mxu1 %vm361_vm1, %v3605_v40  ;;  %v1866_v24 = vpop.f32.mrf.mxu0  ;;  %v1328_v40 = vrot.slane %v3616_v4, 2 }
 0x237   : > { %v1939_v2 = vadd.f32 %v1863_v36, %v1780_v12  ;;  %2388 = vmatmul.msk.f32.gmra.mxu2 %vm361_vm1, %v2549_v34  ;;  %v1803_v12 = vrot.slane %v221_v5, 2 }
 0x238   : > { %2424 = vmatmul.msk.f32.gmra.mxu3 %vm361_vm1, %v4329_v27  ;;  %v1329_v20 = vsel %vm716_vm2, %v1327_v3, %v1328_v40  ;;  %v1331_v48 = vsel %vm716_vm2, %v1328_v40, %v1330_v25  ;;  %v222_v27 = vld [vmem:[%s2707_s19 + $0x1a8] sm:$0x3]  ;;  %s2470_s19 = sshll.u32 %s2657_s16, 8  ;;  %s2062_s16 = scalar_lea.sflag [#allocation3], %s161_s5 }
 0x239   : > { %v1975_v41 = vadd.f32 %v3858_v16, %v1939_v2  ;;  %2460 = vmatmul.msk.f32.gmra.mxu0 %vm361_vm1, %v3651_v19  ;;  %s2073_s17 = scalar_lea.hbm %s4118_s3, %s2470_s19 }
 0x23a   : > { %v1547_v23 = vpop.f32.mrf.mxu2  ;;  %s2076_s24 = sshll.u32 %s2073_s17, 4  ;;  %s2077_s24 = int_to_ptr.hbm [resolvable:$true] %s2076_s24 }
 0x23b   : > { %v1707_v15 = vpop.f32.mrf.mxu3  ;;  %v2007_v55 = vmax.f32 %v1975_v41, 0.0  ;;  %v1621_v63 = vadd.f32 %v1547_v23, %v1465_v14  ;;  %v1394_v56 = vpop.f32.mrf.mxu1  ;;  %v1804_v14 = vsel %vm716_vm2, %v1802_v11, %v1803_v12  ;;  %s2564_s25 = sshra.s32 %s2077_s24, 4  ;;  %s2565_s25 = int_to_ptr.hbm [resolvable:$true] %s2564_s25 }
 0x23c   : > { %v1466_v17 = vadd.f32 %v1394_v56, %v4332_v7  ;;  %s2566_s26 = scalar_lea.hbm %s2565_s25, 256  ;;  %p2571_p0 = scmp.lt.s32.totalorder %s2565_s25, %s4118_s3 }
 0x23d   : > { %2039 = vst [vmem:[%s3872_s9 + $0x50] sm:$0xff] %v2007_v55  ;;  %v1781_v39 = vadd.f32 %v1707_v15, %v1621_v63  ;;  %v1805_v55 = vrot.slane %v222_v27, 2  ;;  %p2567_p11 = scmp.ne.s32.totalorder %s2565_s25, %s2566_s26  ;;  %p2572_p1 = scmp.lt.s32.totalorder %s2570_s29, %s2566_s26 }
 0x23e   : > { %2353 = vmatmul.msk.f32.gmra.mxu1 %vm361_vm1, %v3629_v45  ;;  %v1869_v9 = vpop.f32.mrf.mxu0 }
 0x23f   : > { %v1940_v26 = vadd.f32 %v1866_v24, %v1781_v39  ;;  %2389 = vmatmul.msk.f32.gmra.mxu2 %vm361_vm1, %v4331_v52  ;;  %v1646_v52 = vrot.slane %v222_v27, 1  ;;  %p2568_p12 = pnand %p2567_p11, %p2674_p5  ;;  %p2573_p2 = por %p2572_p1, %p2571_p0 }
 0x240   : > { %2425 = vmatmul.msk.f32.gmra.mxu3 %vm361_vm1, %v3634_v35 }
 0x241   : > { %v1976_v21 = vadd.f32 %v3858_v16, %v1940_v26  ;;  %2461 = vmatmul.msk.f32.gmra.mxu0 %vm361_vm1, %v1329_v20  ;;  %p2569_p13 = pneg %p2568_p12 }
 0x242   : > { %v1550_v29 = vpop.f32.mrf.mxu2 }
 0x243   : > { %v1710_v45 = vpop.f32.mrf.mxu3  ;;  %v2008_v37 = vmax.f32 %v1976_v21, 0.0  ;;  %v1622_v58 = vadd.f32 %v1550_v29, %v1466_v17  ;;  %v1397_v36 = vpop.f32.mrf.mxu1  ;;  %p2574_p3 = pnand %p2573_p2, %p2569_p13 }
 0x244   : > { %v1467_v54 = vadd.f32 %v1397_v36, %v4333_v18 }
 0x245   : > { %2040 = vst [vmem:[%s3872_s9 + $0x58] sm:$0xff] %v2008_v37  ;;  %v1782_v1 = vadd.f32 %v1710_v45, %v1622_v58 }
 0x246   : > { %2354 = vmatmul.msk.f32.gmra.mxu1 %vm361_vm1, %v3651_v19  ;;  %v1872_v35 = vpop.f32.mrf.mxu0 }
 0x247   : > { %v1941_v33 = vadd.f32 %v1869_v9, %v1782_v1  ;;  %2390 = vmatmul.msk.f32.gmra.mxu2 %vm361_vm1, %v3616_v4  ;;  %v1645_v4 = vsel %vm275_vm0, %v1643_v53, %v1644_v59  ;;  %v1647_v9 = vsel %vm275_vm0, %v1644_v59, %v1646_v52 }
 0x248   : > { %2426 = vmatmul.msk.f32.gmra.mxu3 %vm361_vm1, %v3656_v38 }
 0x249   : > { %v1977_v47 = vadd.f32 %v3858_v16, %v1941_v33  ;;  %2462 = vmatmul.msk.f32.gmra.mxu0 %vm361_vm1, %v1331_v48 }
 0x24a   : > { %v1553_v19 = vpop.f32.mrf.mxu2 }
 0x24b   : > { %v1713_v28 = vpop.f32.mrf.mxu3  ;;  %v2009_v24 = vmax.f32 %v1977_v47, 0.0  ;;  %v1623_v2 = vadd.f32 %v1553_v19, %v1467_v54  ;;  %v1400_v34 = vpop.f32.mrf.mxu1 }
 0x24c   : > { %v1468_v3 = vadd.f32 %v1400_v34, %v3658_v22  ;;  %v1806_v22 = vsel %vm716_vm2, %v1803_v12, %v1805_v55 }
 0x24d   : > { %2041 = vst [vmem:[%s3872_s9 + $0x60] sm:$0xff] %v2009_v24  ;;  %v1783_v38 = vadd.f32 %v1713_v28, %v1623_v2 }
 0x24e   : > { %2355 = vmatmul.msk.f32.gmra.mxu1 %vm361_vm1, %v1329_v20  ;;  %v1875_v32 = vpop.f32.mrf.mxu0 }
 0x24f   : > { %v1942_v41 = vadd.f32 %v1872_v35, %v1783_v38  ;;  %2391 = vmatmul.msk.f32.gmra.mxu2 %vm361_vm1, %v220_v49 }
 0x250   : > { %2427 = vmatmul.msk.f32.gmra.mxu3 %vm361_vm1, %v1645_v4 }
 0x251   : > { %v1978_v40 = vadd.f32 %v3858_v16, %v1942_v41  ;;  %2463 = vmatmul.msk.f32.gmra.mxu0 %vm361_vm1, %v1804_v14 }
 0x252   : > { %v1556_v23 = vpop.f32.mrf.mxu2 }
 0x253   : > { %v1716_v15 = vpop.f32.mrf.mxu3  ;;  %v2010_v63 = vmax.f32 %v1978_v40, 0.0  ;;  %v1624_v56 = vadd.f32 %v1556_v23, %v1468_v3  ;;  %v1403_v39 = vpop.f32.mrf.mxu1 }
 0x254   : > { %v1469_v17 = vadd.f32 %v1403_v39, %v3669_v57 }
 0x255   : > { %2042 = vst [vmem:[%s3872_s9 + $0x68] sm:$0xff] %v2010_v63  ;;  %v1784_v20 = vadd.f32 %v1716_v15, %v1624_v56 }
 0x256   : > { %2356 = vmatmul.msk.f32.gmra.mxu1 %vm361_vm1, %v1331_v48  ;;  %v1878_v26 = vpop.f32.mrf.mxu0 }
 0x257   : > { %v1943_v7 = vadd.f32 %v1875_v32, %v1784_v20  ;;  %2392 = vmatmul.msk.f32.gmra.mxu2 %vm361_vm1, %v221_v5 }
 0x258   : > { %2428 = vmatmul.msk.f32.gmra.mxu3 %vm361_vm1, %v1647_v9 }
 0x259   : > { %v1979_v21 = vadd.f32 %v3858_v16, %v1943_v7  ;;  %2464 = vmatmul.msk.f32.gmra.mxu0 %vm361_vm1, %v1806_v22 }
 0x25a   : > { %v1559_v29 = vpop.f32.mrf.mxu2 }
 0x25b   : > { %v1719_v45 = vpop.f32.mrf.mxu3  ;;  %v2011_v25 = vmax.f32 %v1979_v21, 0.0  ;;  %v1625_v37 = vadd.f32 %v1559_v29, %v1469_v17  ;;  %v1406_v58 = vpop.f32.mrf.mxu1 }
 0x25c   : > { %v1470_v5 = vadd.f32 %v1406_v58, %v3680_v46 }
 0x25d   : > { %2043 = vst [vmem:[%s3872_s9 + $0x70] sm:$0xff] %v2011_v25  ;;  %v1785_v36 = vadd.f32 %v1719_v45, %v1625_v37 }
 0x25e   : > { %v1881_v1 = vpop.f32.mrf.mxu0 }
 0x25f   : > { %v1944_v49 = vadd.f32 %v1878_v26, %v1785_v36 }
 0x261   : > { %v1980_v35 = vadd.f32 %v3858_v16, %v1944_v49 }
 0x262   : > { %v1562_v48 = vpop.f32.mrf.mxu2 }
 0x263   : > { %v1722_v57 = vpop.f32.mrf.mxu3  ;;  %v2012_v33 = vmax.f32 %v1980_v35, 0.0  ;;  %v1626_v53 = vadd.f32 %v1562_v48, %v1470_v5  ;;  %v1409_v59 = vpop.f32.mrf.mxu1 }
 0x264   : > { %v1471_v19 = vadd.f32 %v1409_v59, %v3691_v42 }
 0x265   : > { %2044 = vst [vmem:[%s3872_s9 + $0x78] sm:$0xff] %v2012_v33  ;;  %v1786_v18 = vadd.f32 %v1722_v57, %v1626_v53 }
 0x266   : > { %v1884_v54 = vpop.f32.mrf.mxu0 }
 0x267   : > { %v1945_v47 = vadd.f32 %v1881_v1, %v1786_v18 }
 0x269   : > { %v1981_v28 = vadd.f32 %v3858_v16, %v1945_v47 }
 0x26a   : > { %v1565_v11 = vpop.f32.mrf.mxu2 }
 0x26b   : > { %v1725_v12 = vpop.f32.mrf.mxu3  ;;  %v2013_v46 = vmax.f32 %v1981_v28, 0.0  ;;  %v1627_v24 = vadd.f32 %v1565_v11, %v1471_v19  ;;  %v1412_v2 = vpop.f32.mrf.mxu1 }
 0x26c   : > { %v1472_v27 = vadd.f32 %v1412_v2, %v3702_v13 }
 0x26d   : > { %2045 = vst [vmem:[%s3872_s9 + $0x80] sm:$0xff] %v2013_v46  ;;  %v1787_v34 = vadd.f32 %v1725_v12, %v1627_v24 }
 0x26e   : > { %v1887_v4 = vpop.f32.mrf.mxu0 }
 0x26f   : > { %v1946_v38 = vadd.f32 %v1884_v54, %v1787_v34 }
 0x271   : > { %v1982_v32 = vadd.f32 %v3858_v16, %v1946_v38 }
 0x272   : > { %v1568_v14 = vpop.f32.mrf.mxu2 }
 0x273   : > { %v1728_v41 = vpop.f32.mrf.mxu3  ;;  %v2014_v42 = vmax.f32 %v1982_v32, 0.0  ;;  %v1628_v52 = vadd.f32 %v1568_v14, %v1472_v27  ;;  %v1415_v3 = vpop.f32.mrf.mxu1 }
 0x274   : > { %v1473_v55 = vadd.f32 %v1415_v3, %v3713_v8 }
 0x275   : > { %2046 = vst [vmem:[%s3872_s9 + $0x88] sm:$0xff] %v2014_v42  ;;  %v1788_v40 = vadd.f32 %v1728_v41, %v1628_v52 }
 0x276   : > { %v1890_v23 = vpop.f32.mrf.mxu0 }
 0x277   : > { %v1947_v15 = vadd.f32 %v1887_v4, %v1788_v40 }
 0x279   : > { %v1983_v63 = vadd.f32 %v3858_v16, %v1947_v15 }
 0x27a   : > { %v1571_v56 = vpop.f32.mrf.mxu2 }
 0x27b   : > { %v1731_v39 = vpop.f32.mrf.mxu3  ;;  %v2015_v13 = vmax.f32 %v1983_v63, 0.0  ;;  %v1629_v9 = vadd.f32 %v1571_v56, %v1473_v55  ;;  %v1418_v20 = vpop.f32.mrf.mxu1 }
 0x27c   : > { %v1474_v17 = vadd.f32 %v1418_v20, %v3724_v43 }
 0x27d   : > { %2047 = vst [vmem:[%s3872_s9 + $0x90] sm:$0xff] %v2015_v13  ;;  %v1789_v26 = vadd.f32 %v1731_v39, %v1629_v9 }
 0x27e   : > { %v1893_v22 = vpop.f32.mrf.mxu0 }
 0x27f   : > { %v1948_v7 = vadd.f32 %v1890_v23, %v1789_v26 }
 0x281   : > { %v1984_v21 = vadd.f32 %v3858_v16, %v1948_v7 }
 0x282   : > { %v1574_v29 = vpop.f32.mrf.mxu2 }
 0x283   : > { %v1734_v45 = vpop.f32.mrf.mxu3  ;;  %v2016_v8 = vmax.f32 %v1984_v21, 0.0  ;;  %v1630_v25 = vadd.f32 %v1574_v29, %v1474_v17  ;;  %v1421_v37 = vpop.f32.mrf.mxu1 }
 0x284   : > { %v1475_v49 = vadd.f32 %v1421_v37, %v3735_v30 }
 0x285   : > { %2048 = vst [vmem:[%s3872_s9 + $0x98] sm:$0xff] %v2016_v8  ;;  %v1790_v58 = vadd.f32 %v1734_v45, %v1630_v25 }
 0x286   : > { %v1896_v36 = vpop.f32.mrf.mxu0 }
 0x287   : > { %v1949_v1 = vadd.f32 %v1893_v22, %v1790_v58 }
 0x289   : > { %v1985_v5 = vadd.f32 %v3858_v16, %v1949_v1 }
 0x28a   : > { %v1577_v35 = vpop.f32.mrf.mxu2 }
 0x28b   : > { %v1737_v48 = vpop.f32.mrf.mxu3  ;;  %v2017_v43 = vmax.f32 %v1985_v5, 0.0  ;;  %v1631_v57 = vadd.f32 %v1577_v35, %v1475_v49  ;;  %v1424_v33 = vpop.f32.mrf.mxu1 }
 0x28c   : > { %v1476_v54 = vadd.f32 %v1424_v33, %v3746_v61 }
 0x28d   : > { %2049 = vst [vmem:[%s3872_s9 + $0xa0] sm:$0xff] %v2017_v43  ;;  %v1791_v53 = vadd.f32 %v1737_v48, %v1631_v57 }
 0x28e   : > { %v1899_v59 = vpop.f32.mrf.mxu0 }
 0x28f   : > { %v1950_v18 = vadd.f32 %v1896_v36, %v1791_v53 }
 0x291   : > { %v1986_v47 = vadd.f32 %v3858_v16, %v1950_v18 }
 0x292   : > { %v1580_v19 = vpop.f32.mrf.mxu2 }
 0x293   : > { %v1740_v28 = vpop.f32.mrf.mxu3  ;;  %v2018_v30 = vmax.f32 %v1986_v47, 0.0  ;;  %v1632_v11 = vadd.f32 %v1580_v19, %v1476_v54  ;;  %v1427_v12 = vpop.f32.mrf.mxu1 }
 0x294   : > { %v1477_v34 = vadd.f32 %v1427_v12, %v3757_v50 }
 0x295   : > { %2050 = vst [vmem:[%s3872_s9 + $0xa8] sm:$0xff] %v2018_v30  ;;  %v1792_v46 = vadd.f32 %v1740_v28, %v1632_v11 }
 0x296   : > { %v1902_v24 = vpop.f32.mrf.mxu0 }
 0x297   : > { %v1951_v2 = vadd.f32 %v1899_v59, %v1792_v46 }
 0x299   : > { %v1987_v4 = vadd.f32 %v3858_v16, %v1951_v2 }
 0x29a   : > { %v1583_v38 = vpop.f32.mrf.mxu2 }
 0x29b   : > { %v1743_v27 = vpop.f32.mrf.mxu3  ;;  %v2019_v61 = vmax.f32 %v1987_v4, 0.0  ;;  %v1633_v32 = vadd.f32 %v1583_v38, %v1477_v34  ;;  %v1430_v14 = vpop.f32.mrf.mxu1 }
 0x29c   : > { %v1478_v3 = vadd.f32 %v1430_v14, %v3768_v60 }
 0x29d   : > { %2051 = vst [vmem:[%s3872_s9 + $0xb0] sm:$0xff] %v2019_v61  ;;  %v1793_v41 = vadd.f32 %v1743_v27, %v1633_v32 }
 0x29e   : > { %v1905_v42 = vpop.f32.mrf.mxu0 }
 0x29f   : > { %v1952_v52 = vadd.f32 %v1902_v24, %v1793_v41 }
 0x2a1   : > { %v1988_v40 = vadd.f32 %v3858_v16, %v1952_v52 }
 0x2a2   : > { %v1586_v23 = vpop.f32.mrf.mxu2 }
 0x2a3   : > { %v1746_v15 = vpop.f32.mrf.mxu3  ;;  %v2020_v50 = vmax.f32 %v1988_v40, 0.0  ;;  %v1634_v55 = vadd.f32 %v1586_v23, %v1478_v3  ;;  %v1433_v63 = vpop.f32.mrf.mxu1 }
 0x2a4   : > { %v1479_v9 = vadd.f32 %v1433_v63, %v3779_v62 }
 0x2a5   : > { %2052 = vst [vmem:[%s3872_s9 + $0xb8] sm:$0xff] %v2020_v50  ;;  %v1794_v56 = vadd.f32 %v1746_v15, %v1634_v55 }
 0x2a6   : > { %v1908_v39 = vpop.f32.mrf.mxu0 }
 0x2a7   : > { %v1953_v13 = vadd.f32 %v1905_v42, %v1794_v56 }
 0x2a9   : > { %v1989_v20 = vadd.f32 %v3858_v16, %v1953_v13 }
 0x2aa   : > { %v1589_v26 = vpop.f32.mrf.mxu2 }
 0x2ab   : > { %v1749_v22 = vpop.f32.mrf.mxu3  ;;  %v2021_v60 = vmax.f32 %v1989_v20, 0.0  ;;  %v1635_v7 = vadd.f32 %v1589_v26, %v1479_v9  ;;  %v1436_v17 = vpop.f32.mrf.mxu1 }
 0x2ac   : > { %v1480_v8 = vadd.f32 %v1436_v17, %v3790_v0 }
 0x2ad   : > { %2053 = vst [vmem:[%s3872_s9 + $0xc0] sm:$0xff] %v2021_v60  ;;  %v1795_v21 = vadd.f32 %v1749_v22, %v1635_v7 }
 0x2ae   : > { %v1911_v29 = vpop.f32.mrf.mxu0 }
 0x2af   : > { %v1954_v45 = vadd.f32 %v1908_v39, %v1795_v21 }
 0x2b1   : > { %v1990_v25 = vadd.f32 %v3858_v16, %v1954_v45 }
 0x2b2   : > { %v1592_v37 = vpop.f32.mrf.mxu2 }
 0x2b3   : > { %v1752_v58 = vpop.f32.mrf.mxu3  ;;  %v2022_v62 = vmax.f32 %v1990_v25, 0.0  ;;  %v1636_v36 = vadd.f32 %v1592_v37, %v1480_v8  ;;  %v1439_v1 = vpop.f32.mrf.mxu1 }
 0x2b4   : > { %v1481_v48 = vadd.f32 %v1439_v1, %v3801_v31 }
 0x2b5   : > { %2054 = vst [vmem:[%s3872_s9 + $0xc8] sm:$0xff] %v2022_v62  ;;  %v1796_v49 = vadd.f32 %v1752_v58, %v1636_v36 }
 0x2b6   : > { %v1914_v5 = vpop.f32.mrf.mxu0 }
 0x2b7   : > { %v1955_v35 = vadd.f32 %v1911_v29, %v1796_v49 }
 0x2b9   : > { %v1991_v43 = vadd.f32 %v3858_v16, %v1955_v35 }
 0x2ba   : > { %v1595_v57 = vpop.f32.mrf.mxu2 }
 0x2bb   : > { %v1755_v33 = vpop.f32.mrf.mxu3  ;;  %v2023_v0 = vmax.f32 %v1991_v43, 0.0  ;;  %v1637_v53 = vadd.f32 %v1595_v57, %v1481_v48  ;;  %v1442_v59 = vpop.f32.mrf.mxu1 }
 0x2bc   : > { %v1482_v19 = vadd.f32 %v1442_v59, %v3812_v44 }
 0x2bd   : > { %2055 = vst [vmem:[%s3872_s9 + $0xd0] sm:$0xff] %v2023_v0  ;;  %v1797_v18 = vadd.f32 %v1755_v33, %v1637_v53 }
 0x2be   : > { %v1917_v54 = vpop.f32.mrf.mxu0 }
 0x2bf   : > { %v1956_v47 = vadd.f32 %v1914_v5, %v1797_v18 }
 0x2c1   : > { %v1992_v28 = vadd.f32 %v3858_v16, %v1956_v47 }
 0x2c2   : > { %v1598_v30 = vpop.f32.mrf.mxu2 }
 0x2c3   : > { %v1758_v11 = vpop.f32.mrf.mxu3  ;;  %v2024_v31 = vmax.f32 %v1992_v28, 0.0  ;;  %v1638_v12 = vadd.f32 %v1598_v30, %v1482_v19  ;;  %v1445_v46 = vpop.f32.mrf.mxu1 }
 0x2c4   : > { %v1483_v4 = vadd.f32 %v1445_v46, %v3823_v6 }
 0x2c5   : > { %2056 = vst [vmem:[%s3872_s9 + $0xd8] sm:$0xff] %v2024_v31  ;;  %v1798_v24 = vadd.f32 %v1758_v11, %v1638_v12 }
 0x2c6   : > { %v1920_v34 = vpop.f32.mrf.mxu0 }
 0x2c7   : > { %v1957_v2 = vadd.f32 %v1917_v54, %v1798_v24 }
 0x2c9   : > { %v1993_v38 = vadd.f32 %v3858_v16, %v1957_v2 }
 0x2ca   : > { %v1601_v27 = vpop.f32.mrf.mxu2 }
 0x2cb   : > { %v1761_v61 = vpop.f32.mrf.mxu3  ;;  %v2025_v44 = vmax.f32 %v1993_v38, 0.0  ;;  %v1639_v32 = vadd.f32 %v1601_v27, %v1483_v4  ;;  %v1448_v14 = vpop.f32.mrf.mxu1 }
 0x2cc   : > { %v1484_v52 = vadd.f32 %v1448_v14, %v3834_v10 }
 0x2cd   : > { %2057 = vst [vmem:[%s3872_s9 + $0xe0] sm:$0xff] %v2025_v44  ;;  %v1799_v41 = vadd.f32 %v1761_v61, %v1639_v32 }
 0x2ce   : > { %v1923_v40 = vpop.f32.mrf.mxu0 }
 0x2cf   : > { %v1958_v42 = vadd.f32 %v1920_v34, %v1799_v41 }
 0x2d1   : > { %v1994_v3 = vadd.f32 %v3858_v16, %v1958_v42 }
 0x2d2   : > { %v1604_v23 = vpop.f32.mrf.mxu2 }
 0x2d3   : > { %v1764_v15 = vpop.f32.mrf.mxu3  ;;  %v2026_v6 = vmax.f32 %v1994_v3, 0.0  ;;  %v1640_v50 = vadd.f32 %v1604_v23, %v1484_v52  ;;  %v1451_v63 = vpop.f32.mrf.mxu1 }
 0x2d4   : > { %v1485_v39 = vadd.f32 %v1451_v63, %v3845_v51 }
 0x2d5   : > { %2058 = vst [vmem:[%s3872_s9 + $0xe8] sm:$0xff] %v2026_v6  ;;  %v1800_v55 = vadd.f32 %v1764_v15, %v1640_v50 }
 0x2d6   : > { %v1926_v22 = vpop.f32.mrf.mxu0 }
 0x2d7   : > { %v1959_v56 = vadd.f32 %v1923_v40, %v1800_v55 }
 0x2d9   : > { %v1995_v13 = vadd.f32 %v3858_v16, %v1959_v56 }
 0x2da   : > { %v1607_v10 = vpop.f32.mrf.mxu2 }
 0x2db   : > { %v1767_v9 = vpop.f32.mrf.mxu3  ;;  %v2027_v20 = vmax.f32 %v1995_v13, 0.0  ;;  %v1641_v26 = vadd.f32 %v1607_v10, %v1485_v39 }
 0x2dd   : > { %2059 = vst [vmem:[%s3872_s9 + $0xf0] sm:$0xff] %v2027_v20  ;;  %v1801_v60 = vadd.f32 %v1767_v9, %v1641_v26 }
 0x2df   : > { %v1960_v7 = vadd.f32 %v1926_v22, %v1801_v60 }
 0x2e1   : > { %v1996_v51 = vadd.f32 %v3858_v16, %v1960_v7 }
 0x2e3   : > { %v2028_v17 = vmax.f32 %v1996_v51, 0.0 }
 0x2e5   : > { %2060 = vst [vmem:[%s3872_s9 + $0xf8] sm:$0xff] %v2028_v17 }
 0x2e6   : > { %2577 = shalt.err (!%p2574_p3)
}
 0x2e7   : > { %s2614_s5 = smov 128   ;;  %s2615_s6 = smov 8  }
 0x2e8   : > { %2484 = dma.vmem_to_hbm [thread:$0]  (%p2674_p5), %s2075_s20, 4096, %s2077_s24, %s2062_s16, %s2614_s5, %s2614_s5, %s2615_s6  }
 0x2e9 PF: > { %p2490_p4 = scmp.ge.s32.totalorder %s2612_s15, 2  ;;  %s2091_s7 = sand.u32 1, %s2600_s12  }
 0x2ea   : > { %s2092_s8 = scalar_lea.sflag [#allocation3], %s2091_s7 }
 0x2eb   : > { %p2487_p7 = pnand %p2490_p4, %p2678_p6 }
 0x2ed   : > { %p2488_p8 = pneg %p2487_p7 }
 0x2ef   : > { %2595 = dma.done.wait (%p2488_p8), %s2092_s8, 4096  }
 0x2f0   : > { %2597 = vsyncadd (%p2488_p8), %s2092_s8, 4294963200  ;;  %p13_p9 = scmp.ge.s32.totalorder %s2661_s18, 4   ;;  %s4334_s12 = smov %s2604_s13 }
 0x2f1   : > { %s4335_s13 = smov %s2608_s14  ;;  %s4336_s14 = smov %s2672_s21 }
 0x2f2   : > { %s4337_s15 = smov %s2661_s18  ;;  %15 = sbr.rel (!%p13_p9) target bundleno = 3 (0x3), region = 75 }
 0x2f7   :  { %2098 = vsyncpa [#allocation3], 1 }
 0x2f8   :  { %2100 = vsyncpa [#allocation3 + $0x1], 1 }

</bundles_post_ra>
